<compile_context>
chip_gen: v7x
topology: tpu7x:2x2x1
jax: 0.10.0
libtpu: 0.0.40
codegen_flags: <defaults>
</compile_context>

<pallas_src>
import functools

import jax
import jax.numpy as jnp
from jax.experimental import pallas as pl
from jax.experimental.pallas import tpu as pltpu

NEG_SLOPE = 0.01  # nn.LeakyReLU() default negative_slope

# Frame offsets (row = h*6 + w inside a 6x6 frame) of the 3x3 / 2x2 conv taps.
_TAPS3 = (0, 1, 2, 6, 7, 8, 12, 13, 14)   # k=3 taps (i,j): offset 6*i + j
_TAPS2 = (0, 1, 6, 7)                      # k=2 taps


# ----------------------------------------------------------------------------
# Fused per-branch, per-batch-tile kernel
# ----------------------------------------------------------------------------
def _qnet_kernel(x_ref, w1_ref, b1_ref, w2_ref, b2_ref, w3_ref, b3_ref,
                 w4_ref, b4_ref, w5_ref, b5_ref, out_ref, h3_sc, *, bt):
    """x_ref:   (bt*36, 27) f32   pre-im2col conv1 patches (row = b*36 + h*6 + w)
       w1..w4:  (K, Cout)   bf16  per-layer tap-folded conv weights
       w5:      (128, 128)  bf16  Linear, pre-transposed, zero-padded cols
       b1..b5:  (1, Cout)   f32
       out_ref: (bt, 128)   f32
       h3_sc:   VMEM (36*bt - 21, 128) f32 scratch (conv3 output)."""
    m1 = bt * 36          # conv1 output rows (6x6 frame per sample)
    n2 = m1 - 14          # conv2 rows under the garbage-row scheme
    n3 = n2 - 7           # conv3 rows

    def act(y_f32, b_ref):
        y = y_f32 + b_ref[...]
        return jnp.where(y > 0, y, NEG_SLOPE * y)

    # ---- Layer 1: one K=27 matmul (im2col done in the wrapper) ----
    x = x_ref[...].astype(jnp.bfloat16)
    h1 = act(jnp.dot(x, w1_ref[...], preferred_element_type=jnp.float32),
             b1_ref).astype(jnp.bfloat16)                        # (m1, 64)

    # ---- Layer 2: fold the 3x3 taps along K -> (n2,576)x(576,64) ----
    p2 = jnp.concatenate([h1[o:o + n2, :] for o in _TAPS3], axis=1)
    h2 = act(jnp.dot(p2, w2_ref[...], preferred_element_type=jnp.float32),
             b2_ref).astype(jnp.bfloat16)                        # (n2, 64)

    # ---- Layer 3: fold the 2x2 taps along K -> (n3,256)x(256,128) ----
    p3 = jnp.concatenate([h2[o:o + n3, :] for o in _TAPS2], axis=1)
    h3_sc[...] = act(jnp.dot(p3, w3_ref[...],
                             preferred_element_type=jnp.float32), b3_ref)

    # ---- Compaction: conv4 only consumes rows b*36 + {0,1,2,6,7,8,12,13,14}.
    # Strided sublane reads from the VMEM scratch -> (bt, 1152) slab.
    slab = jnp.concatenate(
        [h3_sc[pl.ds(o, bt, stride=36), :] for o in _TAPS3],
        axis=1).astype(jnp.bfloat16)                             # (bt, 1152)

    # ---- Layer 4 (conv4 at its single valid position), fused with gather ----
    feat = act(jnp.dot(slab, w4_ref[...],
                       preferred_element_type=jnp.float32),
               b4_ref).astype(jnp.bfloat16)                      # (bt, 128)

    # ---- Final Linear (output lanes padded 60 -> 128; cols 60.. are zero) ----
    q = jnp.dot(feat, w5_ref[...],
                preferred_element_type=jnp.float32) + b5_ref[...]
    out_ref[...] = q.astype(out_ref.dtype)


def _batch_tiling(batch):
    """Return (batch_tile, padded_batch) satisfying the (8,128) block rules."""
    if batch <= 32:
        return batch, batch                   # single tile: block == full dims
    b_pad = ((batch + 7) // 8) * 8            # pad so an 8-multiple tile exists
    for cand in (32, 16, 8):
        if b_pad % cand == 0:
            return cand, b_pad
    return b_pad, b_pad                       # unreachable


def _qnet_pallas(x_im2col, prepared, *, batch, bt):
    """x_im2col: (batch*36, 27) f32 -> (2, batch, 128) f32 (both branches)."""
    w1, b1, w2, b2, w3, b3, w4, b4, w5, b5 = prepared
    n_tiles = batch // bt
    m1, n2, n3 = bt * 36, bt * 36 - 14, bt * 36 - 21

    flops_per_step = 2 * (m1 * 27 * 64 + n2 * 576 * 64 + n3 * 256 * 128
                          + bt * 1152 * 128 + bt * 128 * 128)
    total_flops = flops_per_step * 2 * n_tiles
    weight_bytes = sum(int(p.size) * p.dtype.itemsize for p in prepared)
    bytes_accessed = (2 * int(x_im2col.size) * 4      # x streamed once/branch
                      + weight_bytes + 2 * batch * 128 * 4)

    grid_spec = pltpu.PrefetchScalarGridSpec(
        num_scalar_prefetch=0,
        grid=(2, n_tiles),                             # (branch, batch tile)
        in_specs=[
            pl.BlockSpec((bt * 36, 27), lambda q, t: (t, 0)),
            pl.BlockSpec((None, 27, 64), lambda q, t: (q, 0, 0)),
            pl.BlockSpec((None, 1, 64), lambda q, t: (q, 0, 0)),
            pl.BlockSpec((None, 576, 64), lambda q, t: (q, 0, 0)),
            pl.BlockSpec((None, 1, 64), lambda q, t: (q, 0, 0)),
            pl.BlockSpec((None, 256, 128), lambda q, t: (q, 0, 0)),
            pl.BlockSpec((None, 1, 128), lambda q, t: (q, 0, 0)),
            pl.BlockSpec((None, 1152, 128), lambda q, t: (q, 0, 0)),
            pl.BlockSpec((None, 1, 128), lambda q, t: (q, 0, 0)),
            pl.BlockSpec((None, 128, 128), lambda q, t: (q, 0, 0)),
            pl.BlockSpec((None, 1, 128), lambda q, t: (q, 0, 0)),
        ],
        out_specs=pl.BlockSpec((None, bt, 128), lambda q, t: (q, t, 0)),
        scratch_shapes=[pltpu.VMEM((n3, 128), jnp.float32)],
    )

    return pl.pallas_call(
        functools.partial(_qnet_kernel, bt=bt),
        out_shape=jax.ShapeDtypeStruct((2, batch, 128), jnp.float32),
        grid_spec=grid_spec,
        compiler_params=pltpu.CompilerParams(
            dimension_semantics=("parallel", "parallel"),
            vmem_limit_bytes=32 * 1024 * 1024),
        cost_estimate=pl.CostEstimate(
            flops=total_flops, transcendentals=0,
            bytes_accessed=bytes_accessed),
    )(x_im2col, w1, b1, w2, b2, w3, b3, w4, b4, w5, b5)


# ----------------------------------------------------------------------------
# Deterministic parameter init (synthetic; matches module shapes / layouts)
# ----------------------------------------------------------------------------
def _uniform(key, shape, fan_in, fan_out):
    bound = (6.0 / (fan_in + fan_out)) ** 0.5
    return jax.random.uniform(key, shape, jnp.float32, -bound, bound)


def init_branch(key):
    ks = jax.random.split(key, 5)
    p = {}
    conv_shapes = [(64, 3, 3, 3), (64, 64, 3, 3), (128, 64, 2, 2), (128, 128, 3, 3)]
    for n, (co, ci, kh, kw) in enumerate(conv_shapes, start=1):
        fan_in, fan_out = ci * kh * kw, co * kh * kw
        p[f"w{n}"] = _uniform(ks[n - 1], (co, ci, kh, kw), fan_in, fan_out)
        p[f"b{n}"] = jnp.zeros((co,), jnp.float32)
    # Linear(128, 60): xavier_uniform, zero bias (weights_init_)
    p["w5"] = _uniform(ks[4], (60, 128), 128, 60)       # PyTorch (out, in)
    p["b5"] = jnp.zeros((60,), jnp.float32)
    return p


def init_params(key):
    k1, k2 = jax.random.split(key)
    return {"q1": init_branch(k1), "q2": init_branch(k2)}


def prepare_params(params):
    """One-time weight prep: tap-folded (KH*KW*Cin, Cout) bf16 matrices per
    conv layer; Linear pre-transposed + zero-padded to 128 lanes; f32 biases.
    Everything stacked over the two Q branches (leading dim 2)."""
    def conv_mat(w_oihw):
        co, ci, kh, kw = w_oihw.shape
        return (jnp.transpose(w_oihw, (2, 3, 1, 0))       # (kh, kw, ci, co)
                .reshape(kh * kw * ci, co).astype(jnp.bfloat16))

    prepared = []
    for n in range(1, 5):
        prepared.append(jnp.stack(
            [conv_mat(params[q][f"w{n}"]) for q in ("q1", "q2")]))
        prepared.append(jnp.stack(
            [params[q][f"b{n}"].reshape(1, -1).astype(jnp.float32)
             for q in ("q1", "q2")]))
    w5 = jnp.stack([jnp.pad(params[q]["w5"].T, ((0, 0), (0, 68)))
                    .astype(jnp.bfloat16) for q in ("q1", "q2")])   # (2,128,128)
    b5 = jnp.stack([jnp.pad(params[q]["b5"], (0, 68)).reshape(1, 128)
                    for q in ("q1", "q2")])                         # (2,1,128)
    prepared += [w5, b5]
    return tuple(prepared)


# ----------------------------------------------------------------------------
# QNetwork forward
# ----------------------------------------------------------------------------
@jax.jit
def qnetwork_forward(prepared, state_nchw):
    """state_nchw: (B, 3, 8, 8) f32 -> (q1, q2) each (B, 60) f32."""
    b = state_nchw.shape[0]
    bt, b_pad = _batch_tiling(b)
    if b_pad != b:
        state_nchw = jnp.pad(state_nchw,
                             ((0, b_pad - b), (0, 0), (0, 0), (0, 0)))
    # NCHW -> NHWC, then im2col for conv1: (b_pad*36, 27) with row = b*36+h*6+w
    # and lane = 3*(3*i + j) + c for tap (i, j), channel c.
    x = jnp.transpose(state_nchw, (0, 2, 3, 1))                   # (b,8,8,3)
    patches = [x[:, i:i + 6, j:j + 6, :] for i in range(3) for j in range(3)]
    x1 = jnp.concatenate(patches, axis=-1).reshape(b_pad * 36, 27)
    x1 = x1.astype(jnp.float32)

    out = _qnet_pallas(x1, prepared, batch=b_pad, bt=bt)          # (2,b_pad,128)
    q = out[:, :b, :60]                                           # drop padding
    # NOTE: PyTorch .squeeze() would yield shape (60,) when B == 1; we always
    # return (B, 60) (shape-only divergence, numerics identical).
    return q[0], q[1]


# ----------------------------------------------------------------------------
# Plain-JAX (f32) reference for validation
# ----------------------------------------------------------------------------
def _ref_conv(x_nhwc, w_oihw, b):
    w_hwio = jnp.transpose(w_oihw, (2, 3, 1, 0))
    y = jax.lax.conv_general_dilated(
        x_nhwc, w_hwio, window_strides=(1, 1), padding="VALID",
        dimension_numbers=("NHWC", "HWIO", "NHWC"))
    y = y + b
    return jnp.where(y > 0, y, NEG_SLOPE * y)


def _ref_forward(params, state_nchw):
    x = jnp.transpose(state_nchw, (0, 2, 3, 1))

    def branch(p):
        h = _ref_conv(x, p["w1"], p["b1"])
        h = _ref_conv(h, p["w2"], p["b2"])
        h = _ref_conv(h, p["w3"], p["b3"])
        h = _ref_conv(h, p["w4"], p["b4"])
        h = h.reshape(h.shape[0], 128)
        return h @ p["w5"].T + p["b5"]

    return branch(params["q1"]), branch(params["q2"])


if __name__ == "__main__":
    key = jax.random.PRNGKey(0)
    pkey, xkey = jax.random.split(key)
    params = init_params(pkey)
    prepared = prepare_params(params)

    # Small deterministic input: batch=2, channels=3, 8x8 spatial.
    state = jax.random.normal(xkey, (2, 3, 8, 8), jnp.float32)

    q1, q2 = qnetwork_forward(prepared, state)
    jax.block_until_ready((q1, q2))

    r1, r2 = _ref_forward(params, state)
    assert q1.shape == (2, 60) and q2.shape == (2, 60)
    err = max(float(jnp.max(jnp.abs(q1 - r1))), float(jnp.max(jnp.abs(q2 - r2))))
    # bf16 matmul operands (f32 accumulation) vs. f32 reference -> loose tol.
    assert jnp.allclose(q1, r1, atol=5e-2, rtol=5e-2), err
    assert jnp.allclose(q2, r2, atol=5e-2, rtol=5e-2), err

    print("KERNEL_OK")
</pallas_src>

<mosaic_0001>
module attributes {stable_mosaic.version = 11 : i64} {
  func.func @_qnet_kernel(%arg0: i32, %arg1: i32, %arg2: memref<72x27xf32, #tpu.memory_space<vmem>>, %arg3: memref<1x27x64xbf16, #tpu.memory_space<vmem>>, %arg4: memref<1x1x64xf32, #tpu.memory_space<vmem>>, %arg5: memref<1x576x64xbf16, #tpu.memory_space<vmem>>, %arg6: memref<1x1x64xf32, #tpu.memory_space<vmem>>, %arg7: memref<1x256x128xbf16, #tpu.memory_space<vmem>>, %arg8: memref<1x1x128xf32, #tpu.memory_space<vmem>>, %arg9: memref<1x1152x128xbf16, #tpu.memory_space<vmem>>, %arg10: memref<1x1x128xf32, #tpu.memory_space<vmem>>, %arg11: memref<1x128x128xbf16, #tpu.memory_space<vmem>>, %arg12: memref<1x1x128xf32, #tpu.memory_space<vmem>>, %arg13: memref<1x2x128xf32, #tpu.memory_space<vmem>>, %arg14: memref<51x128xf32, #tpu.memory_space<vmem>>) attributes {dimension_semantics = [#tpu.dimension_semantics<parallel>, #tpu.dimension_semantics<parallel>], iteration_bounds = array<i64: 2, 1>, scalar_prefetch = 0 : i64, scratch_operands = 1 : i64, tpu.core_type = #tpu.core_type<tc>, window_params = [{transform_indices = @transform_0, window_bounds = array<i64: 72, 27>}, {transform_indices = @transform_1, window_bounds = array<i64: 1, 27, 64>}, {transform_indices = @transform_2, window_bounds = array<i64: 1, 1, 64>}, {transform_indices = @transform_3, window_bounds = array<i64: 1, 576, 64>}, {transform_indices = @transform_4, window_bounds = array<i64: 1, 1, 64>}, {transform_indices = @transform_5, window_bounds = array<i64: 1, 256, 128>}, {transform_indices = @transform_6, window_bounds = array<i64: 1, 1, 128>}, {transform_indices = @transform_7, window_bounds = array<i64: 1, 1152, 128>}, {transform_indices = @transform_8, window_bounds = array<i64: 1, 1, 128>}, {transform_indices = @transform_9, window_bounds = array<i64: 1, 128, 128>}, {transform_indices = @transform_10, window_bounds = array<i64: 1, 1, 128>}, {transform_indices = @transform_11, window_bounds = array<i64: 1, 2, 128>}]} {
    %c0 = arith.constant 0 : index
    %c0_0 = arith.constant 0 : index
    %0 = vector.load %arg2[%c0, %c0_0] : memref<72x27xf32, #tpu.memory_space<vmem>>, vector<72x27xf32>
    %1 = arith.truncf %0 : vector<72x27xf32> to vector<72x27xbf16>
    %c0_1 = arith.constant 0 : index
    %c0_2 = arith.constant 0 : index
    %c0_3 = arith.constant 0 : index
    %2 = vector.load %arg3[%c0_1, %c0_2, %c0_3] : memref<1x27x64xbf16, #tpu.memory_space<vmem>>, vector<1x27x64xbf16>
    %3 = vector.shape_cast %2 : vector<1x27x64xbf16> to vector<27x64xbf16>
    %cst = arith.constant dense<0.000000e+00> : vector<72x64xf32>
    %4 = tpu.matmul %1, %3, %cst {dimension_numbers = #tpu.dot_dimension_numbers<[1], [0], [0], [1], [0, 0, 1, 1], [], []>} : vector<72x27xbf16>, vector<27x64xbf16>, vector<72x64xf32> -> vector<72x64xf32>
    %c0_4 = arith.constant 0 : index
    %c0_5 = arith.constant 0 : index
    %c0_6 = arith.constant 0 : index
    %5 = vector.load %arg4[%c0_4, %c0_5, %c0_6] : memref<1x1x64xf32, #tpu.memory_space<vmem>>, vector<1x1x64xf32>
    %6 = vector.shape_cast %5 : vector<1x1x64xf32> to vector<1x64xf32>
    %7 = vector.broadcast %6 : vector<1x64xf32> to vector<72x64xf32>
    %8 = arith.addf %4, %7 : vector<72x64xf32>
    %cst_7 = arith.constant 0.000000e+00 : f32
    %9 = vector.broadcast %cst_7 : f32 to vector<72x64xf32>
    %10 = arith.cmpf ogt, %8, %9 : vector<72x64xf32>
    %cst_8 = arith.constant 0.00999999977 : f32
    %11 = vector.broadcast %cst_8 : f32 to vector<72x64xf32>
    %12 = arith.mulf %11, %8 : vector<72x64xf32>
    %13 = arith.select %10, %8, %12 : vector<72x64xi1>, vector<72x64xf32>
    %14 = arith.truncf %13 : vector<72x64xf32> to vector<72x64xbf16>
    %15 = vector.extract_strided_slice %14 {offsets = [0, 0], sizes = [58, 64], strides = [1, 1]} : vector<72x64xbf16> to vector<58x64xbf16>
    %16 = vector.extract_strided_slice %14 {offsets = [1, 0], sizes = [58, 64], strides = [1, 1]} : vector<72x64xbf16> to vector<58x64xbf16>
    %17 = vector.extract_strided_slice %14 {offsets = [2, 0], sizes = [58, 64], strides = [1, 1]} : vector<72x64xbf16> to vector<58x64xbf16>
    %18 = vector.extract_strided_slice %14 {offsets = [6, 0], sizes = [58, 64], strides = [1, 1]} : vector<72x64xbf16> to vector<58x64xbf16>
    %19 = vector.extract_strided_slice %14 {offsets = [7, 0], sizes = [58, 64], strides = [1, 1]} : vector<72x64xbf16> to vector<58x64xbf16>
    %20 = vector.extract_strided_slice %14 {offsets = [8, 0], sizes = [58, 64], strides = [1, 1]} : vector<72x64xbf16> to vector<58x64xbf16>
    %21 = vector.extract_strided_slice %14 {offsets = [12, 0], sizes = [58, 64], strides = [1, 1]} : vector<72x64xbf16> to vector<58x64xbf16>
    %22 = vector.extract_strided_slice %14 {offsets = [13, 0], sizes = [58, 64], strides = [1, 1]} : vector<72x64xbf16> to vector<58x64xbf16>
    %23 = vector.extract_strided_slice %14 {offsets = [14, 0], sizes = [58, 64], strides = [1, 1]} : vector<72x64xbf16> to vector<58x64xbf16>
    %24 = tpu.concatenate %15, %16, %17, %18, %19, %20, %21, %22, %23 in 1 : vector<58x64xbf16>, vector<58x64xbf16>, vector<58x64xbf16>, vector<58x64xbf16>, vector<58x64xbf16>, vector<58x64xbf16>, vector<58x64xbf16>, vector<58x64xbf16>, vector<58x64xbf16> -> vector<58x576xbf16>
    %c0_9 = arith.constant 0 : index
    %c0_10 = arith.constant 0 : index
    %c0_11 = arith.constant 0 : index
    %25 = vector.load %arg5[%c0_9, %c0_10, %c0_11] : memref<1x576x64xbf16, #tpu.memory_space<vmem>>, vector<1x576x64xbf16>
    %26 = vector.shape_cast %25 : vector<1x576x64xbf16> to vector<576x64xbf16>
    %cst_12 = arith.constant dense<0.000000e+00> : vector<58x64xf32>
    %27 = tpu.matmul %24, %26, %cst_12 {dimension_numbers = #tpu.dot_dimension_numbers<[1], [0], [0], [1], [0, 0, 1, 1], [], []>} : vector<58x576xbf16>, vector<576x64xbf16>, vector<58x64xf32> -> vector<58x64xf32>
    %c0_13 = arith.constant 0 : index
    %c0_14 = arith.constant 0 : index
    %c0_15 = arith.constant 0 : index
    %28 = vector.load %arg6[%c0_13, %c0_14, %c0_15] : memref<1x1x64xf32, #tpu.memory_space<vmem>>, vector<1x1x64xf32>
    %29 = vector.shape_cast %28 : vector<1x1x64xf32> to vector<1x64xf32>
    %30 = vector.broadcast %29 : vector<1x64xf32> to vector<58x64xf32>
    %31 = arith.addf %27, %30 : vector<58x64xf32>
    %cst_16 = arith.constant 0.000000e+00 : f32
    %32 = vector.broadcast %cst_16 : f32 to vector<58x64xf32>
    %33 = arith.cmpf ogt, %31, %32 : vector<58x64xf32>
    %cst_17 = arith.constant 0.00999999977 : f32
    %34 = vector.broadcast %cst_17 : f32 to vector<58x64xf32>
    %35 = arith.mulf %34, %31 : vector<58x64xf32>
    %36 = arith.select %33, %31, %35 : vector<58x64xi1>, vector<58x64xf32>
    %37 = arith.truncf %36 : vector<58x64xf32> to vector<58x64xbf16>
    %38 = vector.extract_strided_slice %37 {offsets = [0, 0], sizes = [51, 64], strides = [1, 1]} : vector<58x64xbf16> to vector<51x64xbf16>
    %39 = vector.extract_strided_slice %37 {offsets = [1, 0], sizes = [51, 64], strides = [1, 1]} : vector<58x64xbf16> to vector<51x64xbf16>
    %40 = vector.extract_strided_slice %37 {offsets = [6, 0], sizes = [51, 64], strides = [1, 1]} : vector<58x64xbf16> to vector<51x64xbf16>
    %41 = vector.extract_strided_slice %37 {offsets = [7, 0], sizes = [51, 64], strides = [1, 1]} : vector<58x64xbf16> to vector<51x64xbf16>
    %42 = tpu.concatenate %38, %39, %40, %41 in 1 : vector<51x64xbf16>, vector<51x64xbf16>, vector<51x64xbf16>, vector<51x64xbf16> -> vector<51x256xbf16>
    %c0_18 = arith.constant 0 : index
    %c0_19 = arith.constant 0 : index
    %c0_20 = arith.constant 0 : index
    %43 = vector.load %arg7[%c0_18, %c0_19, %c0_20] : memref<1x256x128xbf16, #tpu.memory_space<vmem>>, vector<1x256x128xbf16>
    %44 = vector.shape_cast %43 : vector<1x256x128xbf16> to vector<256x128xbf16>
    %cst_21 = arith.constant dense<0.000000e+00> : vector<51x128xf32>
    %45 = tpu.matmul %42, %44, %cst_21 {dimension_numbers = #tpu.dot_dimension_numbers<[1], [0], [0], [1], [0, 0, 1, 1], [], []>} : vector<51x256xbf16>, vector<256x128xbf16>, vector<51x128xf32> -> vector<51x128xf32>
    %c0_22 = arith.constant 0 : index
    %c0_23 = arith.constant 0 : index
    %c0_24 = arith.constant 0 : index
    %46 = vector.load %arg8[%c0_22, %c0_23, %c0_24] : memref<1x1x128xf32, #tpu.memory_space<vmem>>, vector<1x1x128xf32>
    %47 = vector.shape_cast %46 : vector<1x1x128xf32> to vector<1x128xf32>
    %48 = vector.broadcast %47 : vector<1x128xf32> to vector<51x128xf32>
    %49 = arith.addf %45, %48 : vector<51x128xf32>
    %cst_25 = arith.constant 0.000000e+00 : f32
    %50 = vector.broadcast %cst_25 : f32 to vector<51x128xf32>
    %51 = arith.cmpf ogt, %49, %50 : vector<51x128xf32>
    %cst_26 = arith.constant 0.00999999977 : f32
    %52 = vector.broadcast %cst_26 : f32 to vector<51x128xf32>
    %53 = arith.mulf %52, %49 : vector<51x128xf32>
    %54 = arith.select %51, %49, %53 : vector<51x128xi1>, vector<51x128xf32>
    %c0_27 = arith.constant 0 : index
    %c0_28 = arith.constant 0 : index
    %55 = vector.load %arg14[%c0_27, %c0_28] : memref<51x128xf32, #tpu.memory_space<vmem>>, vector<51x128xf32>
    tpu.vector_store %arg14[%c0_27, %c0_28], %54 {strides = array<i32>} : memref<51x128xf32, #tpu.memory_space<vmem>>, vector<51x128xf32>,
    %c0_29 = arith.constant 0 : index
    %c0_30 = arith.constant 0 : index
    %56 = tpu.strided_load %arg14[%c0_29, %c0_30] {strides = array<i32: 36, 1>} : memref<51x128xf32, #tpu.memory_space<vmem>>, vector<2x128xf32>
    %c1 = arith.constant 1 : index
    %c0_31 = arith.constant 0 : index
    %57 = tpu.strided_load %arg14[%c1, %c0_31] {strides = array<i32: 36, 1>} : memref<51x128xf32, #tpu.memory_space<vmem>>, vector<2x128xf32>
    %c2 = arith.constant 2 : index
    %c0_32 = arith.constant 0 : index
    %58 = tpu.strided_load %arg14[%c2, %c0_32] {strides = array<i32: 36, 1>} : memref<51x128xf32, #tpu.memory_space<vmem>>, vector<2x128xf32>
    %c6 = arith.constant 6 : index
    %c0_33 = arith.constant 0 : index
    %59 = tpu.strided_load %arg14[%c6, %c0_33] {strides = array<i32: 36, 1>} : memref<51x128xf32, #tpu.memory_space<vmem>>, vector<2x128xf32>
    %c7 = arith.constant 7 : index
    %c0_34 = arith.constant 0 : index
    %60 = tpu.strided_load %arg14[%c7, %c0_34] {strides = array<i32: 36, 1>} : memref<51x128xf32, #tpu.memory_space<vmem>>, vector<2x128xf32>
    %c8 = arith.constant 8 : index
    %c0_35 = arith.constant 0 : index
    %61 = tpu.strided_load %arg14[%c8, %c0_35] {strides = array<i32: 36, 1>} : memref<51x128xf32, #tpu.memory_space<vmem>>, vector<2x128xf32>
    %c12 = arith.constant 12 : index
    %c0_36 = arith.constant 0 : index
    %62 = tpu.strided_load %arg14[%c12, %c0_36] {strides = array<i32: 36, 1>} : memref<51x128xf32, #tpu.memory_space<vmem>>, vector<2x128xf32>
    %c13 = arith.constant 13 : index
    %c0_37 = arith.constant 0 : index
    %63 = tpu.strided_load %arg14[%c13, %c0_37] {strides = array<i32: 36, 1>} : memref<51x128xf32, #tpu.memory_space<vmem>>, vector<2x128xf32>
    %c14 = arith.constant 14 : index
    %c0_38 = arith.constant 0 : index
    %64 = tpu.strided_load %arg14[%c14, %c0_38] {strides = array<i32: 36, 1>} : memref<51x128xf32, #tpu.memory_space<vmem>>, vector<2x128xf32>
    %65 = tpu.concatenate %56, %57, %58, %59, %60, %61, %62, %63, %64 in 1 : vector<2x128xf32>, vector<2x128xf32>, vector<2x128xf32>, vector<2x128xf32>, vector<2x128xf32>, vector<2x128xf32>, vector<2x128xf32>, vector<2x128xf32>, vector<2x128xf32> -> vector<2x1152xf32>
    %66 = arith.truncf %65 : vector<2x1152xf32> to vector<2x1152xbf16>
    %c0_39 = arith.constant 0 : index
    %c0_40 = arith.constant 0 : index
    %c0_41 = arith.constant 0 : index
    %67 = vector.load %arg9[%c0_39, %c0_40, %c0_41] : memref<1x1152x128xbf16, #tpu.memory_space<vmem>>, vector<1x1152x128xbf16>
    %68 = vector.shape_cast %67 : vector<1x1152x128xbf16> to vector<1152x128xbf16>
    %cst_42 = arith.constant dense<0.000000e+00> : vector<2x128xf32>
    %69 = tpu.matmul %66, %68, %cst_42 {dimension_numbers = #tpu.dot_dimension_numbers<[1], [0], [0], [1], [0, 0, 1, 1], [], []>} : vector<2x1152xbf16>, vector<1152x128xbf16>, vector<2x128xf32> -> vector<2x128xf32>
    %c0_43 = arith.constant 0 : index
    %c0_44 = arith.constant 0 : index
    %c0_45 = arith.constant 0 : index
    %70 = vector.load %arg10[%c0_43, %c0_44, %c0_45] : memref<1x1x128xf32, #tpu.memory_space<vmem>>, vector<1x1x128xf32>
    %71 = vector.shape_cast %70 : vector<1x1x128xf32> to vector<1x128xf32>
    %72 = vector.broadcast %71 : vector<1x128xf32> to vector<2x128xf32>
    %73 = arith.addf %69, %72 : vector<2x128xf32>
    %cst_46 = arith.constant 0.000000e+00 : f32
    %74 = vector.broadcast %cst_46 : f32 to vector<2x128xf32>
    %75 = arith.cmpf ogt, %73, %74 : vector<2x128xf32>
    %cst_47 = arith.constant 0.00999999977 : f32
    %76 = vector.broadcast %cst_47 : f32 to vector<2x128xf32>
    %77 = arith.mulf %76, %73 : vector<2x128xf32>
    %78 = arith.select %75, %73, %77 : vector<2x128xi1>, vector<2x128xf32>
    %79 = arith.truncf %78 : vector<2x128xf32> to vector<2x128xbf16>
    %c0_48 = arith.constant 0 : index
    %c0_49 = arith.constant 0 : index
    %c0_50 = arith.constant 0 : index
    %80 = vector.load %arg11[%c0_48, %c0_49, %c0_50] : memref<1x128x128xbf16, #tpu.memory_space<vmem>>, vector<1x128x128xbf16>
    %81 = vector.shape_cast %80 : vector<1x128x128xbf16> to vector<128x128xbf16>
    %cst_51 = arith.constant dense<0.000000e+00> : vector<2x128xf32>
    %82 = tpu.matmul %79, %81, %cst_51 {dimension_numbers = #tpu.dot_dimension_numbers<[1], [0], [0], [1], [0, 0, 1, 1], [], []>} : vector<2x128xbf16>, vector<128x128xbf16>, vector<2x128xf32> -> vector<2x128xf32>
    %c0_52 = arith.constant 0 : index
    %c0_53 = arith.constant 0 : index
    %c0_54 = arith.constant 0 : index
    %83 = vector.load %arg12[%c0_52, %c0_53, %c0_54] : memref<1x1x128xf32, #tpu.memory_space<vmem>>, vector<1x1x128xf32>
    %84 = vector.shape_cast %83 : vector<1x1x128xf32> to vector<1x128xf32>
    %85 = vector.broadcast %84 : vector<1x128xf32> to vector<2x128xf32>
    %86 = arith.addf %82, %85 : vector<2x128xf32>
    %c0_55 = arith.constant 0 : index
    %c0_56 = arith.constant 0 : index
    %c0_57 = arith.constant 0 : index
    %87 = vector.load %arg13[%c0_55, %c0_56, %c0_57] : memref<1x2x128xf32, #tpu.memory_space<vmem>>, vector<1x2x128xf32>
    %88 = vector.shape_cast %87 : vector<1x2x128xf32> to vector<2x128xf32>
    %89 = vector.shape_cast %86 : vector<2x128xf32> to vector<1x2x128xf32>
    tpu.vector_store %arg13[%c0_55, %c0_56, %c0_57], %89 {strides = array<i32>} : memref<1x2x128xf32, #tpu.memory_space<vmem>>, vector<1x2x128xf32>,
    return
  }
  func.func @transform_0(%arg0: i32, %arg1: i32) -> (i32, i32) {
    %c0_i32 = arith.constant 0 : i32
    %c0_i32_0 = arith.constant 0 : i32
    return %arg1, %c0_i32 : i32, i32
  }
  func.func @transform_1(%arg0: i32, %arg1: i32) -> (i32, i32, i32) {
    %c0_i32 = arith.constant 0 : i32
    %c0_i32_0 = arith.constant 0 : i32
    %c0_i32_1 = arith.constant 0 : i32
    return %arg0, %c0_i32, %c0_i32_0 : i32, i32, i32
  }
  func.func @transform_2(%arg0: i32, %arg1: i32) -> (i32, i32, i32) {
    %c0_i32 = arith.constant 0 : i32
    %c0_i32_0 = arith.constant 0 : i32
    %c0_i32_1 = arith.constant 0 : i32
    return %arg0, %c0_i32, %c0_i32_0 : i32, i32, i32
  }
  func.func @transform_3(%arg0: i32, %arg1: i32) -> (i32, i32, i32) {
    %c0_i32 = arith.constant 0 : i32
    %c0_i32_0 = arith.constant 0 : i32
    %c0_i32_1 = arith.constant 0 : i32
    return %arg0, %c0_i32, %c0_i32_0 : i32, i32, i32
  }
  func.func @transform_4(%arg0: i32, %arg1: i32) -> (i32, i32, i32) {
    %c0_i32 = arith.constant 0 : i32
    %c0_i32_0 = arith.constant 0 : i32
    %c0_i32_1 = arith.constant 0 : i32
    return %arg0, %c0_i32, %c0_i32_0 : i32, i32, i32
  }
  func.func @transform_5(%arg0: i32, %arg1: i32) -> (i32, i32, i32) {
    %c0_i32 = arith.constant 0 : i32
    %c0_i32_0 = arith.constant 0 : i32
    %c0_i32_1 = arith.constant 0 : i32
    return %arg0, %c0_i32, %c0_i32_0 : i32, i32, i32
  }
  func.func @transform_6(%arg0: i32, %arg1: i32) -> (i32, i32, i32) {
    %c0_i32 = arith.constant 0 : i32
    %c0_i32_0 = arith.constant 0 : i32
    %c0_i32_1 = arith.constant 0 : i32
    return %arg0, %c0_i32, %c0_i32_0 : i32, i32, i32
  }
  func.func @transform_7(%arg0: i32, %arg1: i32) -> (i32, i32, i32) {
    %c0_i32 = arith.constant 0 : i32
    %c0_i32_0 = arith.constant 0 : i32
    %c0_i32_1 = arith.constant 0 : i32
    return %arg0, %c0_i32, %c0_i32_0 : i32, i32, i32
  }
  func.func @transform_8(%arg0: i32, %arg1: i32) -> (i32, i32, i32) {
    %c0_i32 = arith.constant 0 : i32
    %c0_i32_0 = arith.constant 0 : i32
    %c0_i32_1 = arith.constant 0 : i32
    return %arg0, %c0_i32, %c0_i32_0 : i32, i32, i32
  }
  func.func @transform_9(%arg0: i32, %arg1: i32) -> (i32, i32, i32) {
    %c0_i32 = arith.constant 0 : i32
    %c0_i32_0 = arith.constant 0 : i32
    %c0_i32_1 = arith.constant 0 : i32
    return %arg0, %c0_i32, %c0_i32_0 : i32, i32, i32
  }
  func.func @transform_10(%arg0: i32, %arg1: i32) -> (i32, i32, i32) {
    %c0_i32 = arith.constant 0 : i32
    %c0_i32_0 = arith.constant 0 : i32
    %c0_i32_1 = arith.constant 0 : i32
    return %arg0, %c0_i32, %c0_i32_0 : i32, i32, i32
  }
  func.func @transform_11(%arg0: i32, %arg1: i32) -> (i32, i32, i32) {
    %c0_i32 = arith.constant 0 : i32
    %c0_i32_0 = arith.constant 0 : i32
    return %arg0, %arg1, %c0_i32 : i32, i32, i32
  }
}

</mosaic_0001>

<bundles_post_ra>
// kernel: qnetwork_forward.1
= control target key start
LH: loop header
LB: loop body
LE: loop exit
PB: predicated region body
PF: predicated region fallthrough
CT: control target
= control target key end

     0   :  { %s3668_s17 = smov 0   ;;  %s3670_s18 = smov 0   ;;  %s4139_s0 = inlined_call_operand.vmem [shape: f32[72,27], index: 0, kind: input, shape index: {}]   ;;  %s4140_s1 = inlined_call_operand.vmem [shape: bf16[2,27,64], index: 1, kind: input, shape index: {}]   ;;  %s4141_s2 = inlined_call_operand.vmem [shape: f32[2,1,64], index: 2, kind: input, shape index: {}]   ;;  %s4142_s3 = inlined_call_operand.vmem [shape: bf16[2,576,64], index: 3, kind: input, shape index: {}]   ;;  %s4143_s4 = inlined_call_operand.vmem [shape: f32[2,1,64], index: 4, kind: input, shape index: {}]   ;;  %s4144_s5 = inlined_call_operand.vmem [shape: bf16[2,256,128], index: 5, kind: input, shape index: {}]   ;;  %s4145_s6 = inlined_call_operand.vmem [shape: f32[2,1,128], index: 6, kind: input, shape index: {}]   ;;  %s4146_s7 = inlined_call_operand.vmem [shape: bf16[2,1152,128], index: 7, kind: input, shape index: {}]   ;;  %s4147_s8 = inlined_call_operand.vmem [shape: f32[2,1,128], index: 8, kind: input, shape index: {}]   ;;  %s4148_s9 = inlined_call_operand.vmem [shape: bf16[2,128,128], index: 9, kind: input, shape index: {}]   ;;  %s4149_s10 = inlined_call_operand.vmem [shape: f32[2,1,128], index: 10, kind: input, shape index: {}]   ;;  %s4150_s11 = inlined_call_operand.vmem [shape: f32[2,2,128], index: 11, kind: output, shape index: {}]  }
   0x1   :  { %s3672_s19 = smov 0  }
   0x2 LB: > { %s33_s20 = sadd.s32 1, %s3598_s18  ;;  %p2928_p0 = scmp.ge.s32.totalorder %s3602_s19, 1  ;;  %s3602_s19 = sphi %s3672_s19, %s21_s19   ;;  %s3598_s18 = sphi %s3670_s18, %s4152_s18   ;;  %s3594_s17 = sphi %s3668_s17, %s4151_s17  }
   0x3   : > { %p35_p1 = scmp.ge.s32.totalorder %s33_s20, 2  ;;  %p442_p2 = scmp.lt.s32.totalorder %s3602_s19, 3 }
   0x5   : > { %s4154_s20 = smov (%p35_p1, %s33_s20), 0  ;;  %p443_p3 = pnand %p2928_p0, %p442_p2 }
   0x6   : > { %p530_p4 = scmp.lt.s32.totalorder (!%p443_p3), %s3594_s17, 1  ;;  %vm630_vm0 = vcmask (!%p443_p3), 1044480   ;;  %v3604_v0 = vmov (!%p443_p3), 0.0   ;;  %vm3605_vm1 = vmmov (!%p443_p3), 0   ;;  %vm631_vm2 = vcmask (!%p443_p3), 1045504   ;;  %v578_v6 = vld [vmem:[%s4139_s0] sm:$0xff] (!%p443_p3) }
   0x7   : > { %446 = sbr.rel (%p443_p3) target bundleno = 1501 (0x5dd), region = 64  ;;  %3332 = vmatprep.subr.bf16.mxu0 (!%p443_p3), %v3604_v0  ;;  %3412 = vmatprep.subr.bf16.mxu1 (!%p443_p3), %v3604_v0  ;;  %v3606_v1 = vmov (!%p443_p3), 65535   ;;  %v579_v7 = vld [vmem:[%s4139_s0 + $0x8] sm:$0xff] (!%p443_p3)  ;;  %v586_v8 = vld [vmem:[%s4139_s0 + $0x40] sm:$0xff] (!%p443_p3)  ;;  %vm614_vm3 = vcmask (!%p443_p3), 220160   ;;  %v580_v12 = vld [vmem:[%s4139_s0 + $0x10] sm:$0xff] (!%p443_p3) }
   0x8   : > { %3336 = vmatprep.mubr.msk.bf16.mxu0 (!%p443_p3), %vm3605_vm1, %v3604_v0  ;;  %3352 = vmatprep.mubr.msk.bf16.mxu1 (!%p443_p3), %vm3605_vm1, %v3604_v0  ;;  %v632_v2 = vsel (!%p443_p3), %vm630_vm0, 4294967295, %v3606_v1  ;;  %v587_v10 = vpack.c.bf16 (!%p443_p3), %v579_v7, %v578_v6  ;;  %v591_v11 = vpack.c.bf16 (!%p443_p3), %v586_v8, %v586_v8  ;;  %v581_v13 = vld [vmem:[%s4139_s0 + $0x18] sm:$0xff] (!%p443_p3)  ;;  %v582_v15 = vld [vmem:[%s4139_s0 + $0x20] sm:$0xff] (!%p443_p3)  ;;  %v583_v16 = vld [vmem:[%s4139_s0 + $0x28] sm:$0xff] (!%p443_p3)  ;;  %s3607_s16 = smov (!%p443_p3), 64  }
   0x9   : > { %v633_v4 = vsel (!%p443_p3), %vm631_vm2, %v632_v2, 0  ;;  %v588_v14 = vpack.c.bf16 (!%p443_p3), %v581_v13, %v580_v12  ;;  %v589_v17 = vpack.c.bf16 (!%p443_p3), %v583_v16, %v582_v15  ;;  %v584_v18 = vld [vmem:[%s4139_s0 + $0x30] sm:$0xff] (!%p443_p3)  ;;  %v585_v19 = vld [vmem:[%s4139_s0 + $0x38] sm:$0xff] (!%p443_p3)  ;;  %vm741_vm10 = vsmask.f32 (!%p443_p3), 7424 }
   0xa   : > { %v590_v20 = vpack.c.bf16 (!%p443_p3), %v585_v19, %v584_v18  ;;  %vm809_vm11 = vsmask.f32 (!%p443_p3), 4352  ;;  %vm859_vm15 = vsmask.f32 (!%p443_p3), 1280  ;;  %vm831_vm2 = vcmask (!%p443_p3), 1043456  }
   0xe   : > { %s4156_s17 = smov (!%p530_p4, %s3594_s17), 1 }
   0xf   : > { %s3088_s21 = sshll.u32 %s4156_s17, 4  ;;  %s3416_s28 = smul.u32 288, %s4156_s17 }
  0x10   : > { %s534_s24 = scalar_lea.vmem %s4140_s1, %s3088_s21  ;;  %s537_s15 = scalar_lea.vmem %s4141_s2, %s4156_s17 }
  0x11   : > { %v3446_v3 = vld [vmem:[%s534_s24] sm:$0xff]   ;;  %v3447_v5 = vld [vmem:[%s534_s24 + $0x8] sm:$0x3f]   ;;  %s3743_s12 = scalar_lea.vmem %s4142_s3, %s3416_s28  ;;  %s3089_s21 = sshll.u32 %s4156_s17, 7 }
  0x12   : > { %3333 = vmatpush3.bf16.msra.mxu0 %v3446_v3  ;;  %3414 = vmatpush3.bf16.msra.mxu1 %v3446_v3  ;;  %v635_v9 = vand.u32 %v3447_v5, %v633_v4  ;;  %v3448_v21 = vld [vmem:[%s3743_s12 + $0x40] sm:$0xff]   ;;  %v3450_v23 = vld [vmem:[%s3743_s12 + $0x48] sm:$0xff]   ;;  %v3452_v25 = vld [vmem:[%s3743_s12 + $0x50] sm:$0xff]   ;;  %s550_s24 = scalar_lea.vmem %s4144_s5, %s3089_s21  ;;  %s545_s27 = scalar_lea.vmem %s4143_s4, %s4156_s17 }
  0x13   : > { %3334 = vmatprep.subr.bf16.mxu0 %v3604_v0  ;;  %3413 = vmatprep.subr.bf16.mxu1 %v3604_v0  ;;  %v3449_v22 = vld [vmem:[%s3743_s12] sm:$0xff]   ;;  %v3451_v24 = vld [vmem:[%s3743_s12 + $0x8] sm:$0xff]   ;;  %v3453_v26 = vld [vmem:[%s3743_s12 + $0x10] sm:$0xff]   ;;  %s3417_s28 = smul.u32 576, %s4156_s17  ;;  %s561_s26 = scalar_lea.vmem %s4147_s8, %s4156_s17 }
  0x14   : > { %v3454_v27 = vld [vmem:[%s3743_s12 + $0x58] sm:$0xff]   ;;  %v3458_v29 = vld [vmem:[%s3743_s12 + $0xc0] sm:$0xff]   ;;  %v3462_v33 = vld [vmem:[%s3743_s12 + $0xc8] sm:$0xff]   ;;  %s569_s29 = scalar_lea.vmem %s4149_s10, %s4156_s17  ;;  %s2937_s30 = sshll.u32 %s4156_s17, 1 }
  0x15   : > { %v3455_v28 = vld [vmem:[%s3743_s12 + $0x18] sm:$0xff]   ;;  %v3456_v30 = vld [vmem:[%s3743_s12 + $0x60] sm:$0xff]   ;;  %v3459_v34 = vld [vmem:[%s3743_s12 + $0x68] sm:$0xff]   ;;  %s576_s14 = scalar_lea.vmem %s4150_s11, %s2937_s30 }
  0x16   : > { %3335 = vmatpush3.bf16.msra.mxu0 %v635_v9  ;;  %3415 = vmatpush3.bf16.msra.mxu1 %v635_v9  ;;  %v3460_v31 = vld [vmem:[%s3743_s12 + $0x80] sm:$0xff]   ;;  %v3464_v35 = vld [vmem:[%s3743_s12 + $0x88] sm:$0xff]   ;;  %v3463_v37 = vld [vmem:[%s3743_s12 + $0x70] sm:$0xff]  }
  0x17   : > { %3098 = vmatprep.subr.bf16.mxu1 %v3448_v21  ;;  %3138 = vmatprep.subr.bf16.mxu0 %v3458_v29  ;;  %v3457_v32 = vld [vmem:[%s3743_s12 + $0x20] sm:$0xff]   ;;  %v3461_v36 = vld [vmem:[%s3743_s12 + $0x28] sm:$0xff]   ;;  %v3466_v38 = vld [vmem:[%s3743_s12 + $0xd0] sm:$0xff]  }
  0x18   : > { %v3465_v39 = vld [vmem:[%s3743_s12 + $0x30] sm:$0xff]   ;;  %v3768_v40 = vld [vmem:[%s537_s15] ss:$0 sm:$0xff]  ;;  %v3467_v55 = vld [vmem:[%s3743_s12 + $0x78] sm:$0xff]   ;;  %s553_s15 = scalar_lea.vmem %s4145_s6, %s4156_s17 }
  0x19   : > { %3337 = vmatmul.mubr.msk.bf16.vlgmr.msra.gmra.mrb[0].mxu0 %vm614_vm3, %v587_v10  ;;  %3353 = vmatmul.mubr.msk.bf16.vlgmr.msra.gmra.mrb[0].mxu1 %vm614_vm3, %v591_v11  ;;  %v3468_v56 = vld [vmem:[%s3743_s12 + $0x90] sm:$0xff]   ;;  %v3469_v57 = vld [vmem:[%s3743_s12 + $0x38] sm:$0xff]   ;;  %v3790_v7 = vld [vmem:[%s3743_s12 + $0x100] sm:$0xff]  }
  0x1a   : > { %3340 = vmatprep.mubr.msk.bf16.mxu0 %vm3605_vm1, %v3604_v0  ;;  %3099 = vmatpush3.bf16.msra.mxu1 %v3449_v22  ;;  %v3470_v62 = vld [vmem:[%s3743_s12 + $0xd8] sm:$0xff]   ;;  %v3473_v9 = vld [vmem:[%s3743_s12 + $0xe0] sm:$0xff]   ;;  %v3475_v19 = vld [vmem:[%s3743_s12 + $0xe8] sm:$0xff]  }
  0x1b   : > { %3100 = vmatprep.subr.bf16.mxu1 %v3450_v23  ;;  %3139 = vmatpush3.bf16.msra.mxu0 %v3460_v31  ;;  %v3471_v6 = vld [vmem:[%s3743_s12 + $0x98] sm:$0xff]   ;;  %v3474_v12 = vld [vmem:[%s3743_s12 + $0xa0] sm:$0xff]  }
  0x1c   : > { %3140 = vmatprep.subr.bf16.mxu0 %v3462_v33 }
  0x1e   : > { %3101 = vmatpush3.bf16.msra.mxu1 %v3451_v24 }
  0x1f   : > { %3102 = vmatprep.subr.bf16.mxu1 %v3452_v25  ;;  %3141 = vmatpush3.bf16.msra.mxu0 %v3464_v35 }
  0x20   : > { %3142 = vmatprep.subr.bf16.mxu0 %v3466_v38 }
  0x21   : > { %3341 = vmatmul.mubr.msk.bf16.gmra.mrb[4].mxu0 %vm614_vm3, %v588_v14 }
  0x22   : > { %3344 = vmatprep.mubr.msk.bf16.mxu0 %vm3605_vm1, %v3604_v0  ;;  %3103 = vmatpush3.bf16.msra.mxu1 %v3453_v26 }
  0x23   : > { %3104 = vmatprep.subr.bf16.mxu1 %v3454_v27  ;;  %3143 = vmatpush3.bf16.msra.mxu0 %v3468_v56 }
  0x24   : > { %3144 = vmatprep.subr.bf16.mxu0 %v3470_v62 }
  0x26   : > { %3105 = vmatpush3.bf16.msra.mxu1 %v3455_v28 }
  0x27   : > { %3106 = vmatprep.subr.bf16.mxu1 %v3456_v30  ;;  %3145 = vmatpush3.bf16.msra.mxu0 %v3471_v6  ;;  %v3476_v30 = vld [vmem:[%s3743_s12 + $0xa8] sm:$0xff]  }
  0x28   : > { %3146 = vmatprep.subr.bf16.mxu0 %v3473_v9 }
  0x29   : > { %3345 = vmatmul.mubr.msk.bf16.gmra.mrb[8].mxu0 %vm614_vm3, %v589_v17 }
  0x2a   : > { %3348 = vmatprep.mubr.msk.bf16.mxu0 %vm3605_vm1, %v3604_v0  ;;  %3107 = vmatpush3.bf16.msra.mxu1 %v3457_v32 }
  0x2b   : > { %3108 = vmatprep.subr.bf16.mxu1 %v3459_v34  ;;  %3147 = vmatpush3.bf16.msra.mxu0 %v3474_v12  ;;  %v3478_v34 = vld [vmem:[%s3743_s12 + $0xf0] sm:$0xff]  }
  0x2c   : > { %3148 = vmatprep.subr.bf16.mxu0 %v3475_v19 }
  0x2e   : > { %3109 = vmatpush3.bf16.msra.mxu1 %v3461_v36 }
  0x2f   : > { %3110 = vmatprep.subr.bf16.mxu1 %v3463_v37  ;;  %3149 = vmatpush3.bf16.msra.mxu0 %v3476_v30 }
  0x30   : > { %3150 = vmatprep.subr.bf16.mxu0 %v3478_v34 }
  0x31   : > { %3349 = vmatmul.mubr.msk.bf16.gmra.mrb[12].mxu0 %vm614_vm3, %v590_v20  ;;  %vm785_vm3 = vcmask 1046528  }
  0x32   : > { %3111 = vmatpush3.bf16.msra.mxu1 %v3465_v39  ;;  %v3479_v39 = vld [vmem:[%s3743_s12 + $0xb0] sm:$0xff]  }
  0x33   : > { %3112 = vmatprep.subr.bf16.mxu1 %v3467_v55  ;;  %3151 = vmatpush3.bf16.msra.mxu0 %v3479_v39 }
  0x36   : > { %3113 = vmatpush3.bf16.msra.mxu1 %v3469_v57  ;;  %v3481_v57 = vld [vmem:[%s3743_s12 + $0xb8] sm:$0xff]  }
  0x37   : > { %3356 = vmatprep.subr.bf16.mxu1 %v3790_v7 }
  0xec   : > { %v671_v41 = vpop.f32.mrb[0].mxu0  ;;  %v3770_v42 = vpop.f32.mrb[0].mxu1 }
  0xed   : > { %v672_v43 = vadd.f32 %v3768_v40, %v671_v41  ;;  %v3338_v44 = vpop.f32.mrb[1].mxu0  ;;  %v3354_v45 = vpop.f32.mrb[1].mxu1  ;;  %v704_v36 = vadd.f32 %v3768_v40, %v3770_v42 }
  0xee   : > { %v674_v46 = vpop.f32.mrb[2].mxu0  ;;  %v706_v47 = vpop.f32.mrb[2].mxu1 }
  0xef   : > { %v718_v48 = vmul.f32 0.01, %v672_v43  ;;  %v675_v49 = vadd.f32 %v3768_v40, %v674_v46  ;;  %v3339_v50 = vpop.f32.mrb[3].mxu0  ;;  %v3355_v51 = vpop.f32.mrb[3].mxu1  ;;  %vm709_vm4 = vcmp.gt.f32.partialorder %v672_v43, 0.0  ;;  %vm717_vm12 = vcmp.gt.f32.partialorder %v704_v36, 0.0 }
  0xf0   : > { %v726_v51 = vmul.f32 0.01, %v704_v36 }
  0xf1   : > { %vm710_vm5 = vcmp.gt.f32.partialorder %v675_v49, 0.0  ;;  %v719_v52 = vmul.f32 0.01, %v675_v49  ;;  %v727_v53 = vsel %vm709_vm4, %v672_v43, %v718_v48  ;;  %v3480_v48 = vld [vmem:[%s3743_s12 + $0xf8] sm:$0xff]   ;;  %vm899_vm4 = vcmask 523264  }
  0xf2   : > { %3152 = vmatprep.subr.bf16.mxu0 %v3480_v48 }
  0xf3   : > { %v728_v54 = vsel %vm710_vm5, %v675_v49, %v719_v52  ;;  %3153 = vmatpush3.bf16.msra.mxu0 %v3481_v57  ;;  %vm849_vm5 = vcmask 1041408  }
  0xf4   : > { %v3777_v58 = vpack.c.bf16 %v728_v54, %v727_v53  ;;  %v679_v59 = vpop.f32.mrb[4].mxu0 }
  0xf5   : > { %v680_v60 = vadd.f32 %v3768_v40, %v679_v59  ;;  %v3342_v61 = vpop.f32.mrb[5].mxu0 }
  0xf6   : > { %v682_v63 = vpop.f32.mrb[6].mxu0  ;;  %v3783_v4 = vshrl.u32 %v3777_v58, 16  ;;  %v3786_v5 = vshll.u32 %v3777_v58, 16  ;;  %v794_v22 = vrot.slane %v3777_v58, 3 }
  0xf7   : > { %v720_v1 = vmul.f32 0.01, %v680_v60  ;;  %v683_v2 = vadd.f32 %v3768_v40, %v682_v63  ;;  %v3343_v3 = vpop.f32.mrb[7].mxu0  ;;  %vm711_vm6 = vcmp.gt.f32.partialorder %v680_v60, 0.0  ;;  %v735_v63 = vsel %vm717_vm12, %v704_v36, %v726_v51 }
  0xf8   : > { %v810_v13 = vrot.slane %v3783_v4, 3  ;;  %v811_v14 = vrot.slane %v3786_v5, 4  ;;  %v747_v24 = vrot.slane %v3786_v5, 1 }
  0xf9   : > { %vm712_vm7 = vcmp.gt.f32.partialorder %v683_v2, 0.0  ;;  %v721_v8 = vmul.f32 0.01, %v683_v2  ;;  %v729_v10 = vsel %vm711_vm6, %v680_v60, %v720_v1  ;;  %vm889_vm6 = vcmask 1040384  }
  0xfa   : > { %v3801_v20 = vor.u32 %v811_v14, %v810_v13  ;;  %v748_v35 = vor.u32 %v747_v24, %v3783_v4  ;;  %v3847_v13 = vpack.c.bf16 %v735_v63, %v735_v63 }
  0xfb   : > { %v730_v11 = vsel %vm712_vm7, %v683_v2, %v721_v8 }
  0xfc   : > { %v3797_v15 = vpack.c.bf16 %v730_v11, %v729_v10  ;;  %v687_v16 = vpop.f32.mrb[8].mxu0 }
  0xfd   : > { %v688_v17 = vadd.f32 %v3768_v40, %v687_v16  ;;  %v3346_v18 = vpop.f32.mrb[9].mxu0 }
  0xfe   : > { %v690_v21 = vpop.f32.mrb[10].mxu0  ;;  %v795_v23 = vrot.slane %v3797_v15, 3  ;;  %v3807_v25 = vshll.u32 %v3797_v15, 16  ;;  %v3811_v29 = vshrl.u32 %v3797_v15, 16  ;;  %v861_v18 = vrot.slane %v3786_v5, 7 }
  0xff   : > { %v722_v26 = vmul.f32 0.01, %v688_v17  ;;  %v691_v27 = vadd.f32 %v3768_v40, %v690_v21  ;;  %v3347_v28 = vpop.f32.mrb[11].mxu0  ;;  %vm713_vm8 = vcmp.gt.f32.partialorder %v688_v17, 0.0  ;;  %v833_v5 = vrot.slane %v3797_v15, 4 }
 0x100   : > { %v796_v31 = vsel %vm630_vm0, %v794_v22, %v795_v23  ;;  %v752_v32 = vrot.slane %v3807_v25, 1  ;;  %v813_v41 = vrot.slane %v3811_v29, 3  ;;  %v814_v43 = vrot.slane %v3807_v25, 4 }
 0x101   : > { %vm714_vm9 = vcmp.gt.f32.partialorder %v691_v27, 0.0  ;;  %v723_v33 = vmul.f32 0.01, %v691_v27  ;;  %801 = vrot.lane.b32.xlu0 %v796_v31, %s3607_s16  ;;  %v731_v37 = vsel %vm713_vm8, %v688_v17, %v722_v26  ;;  %v863_v2 = vrot.slane %v3811_v29, 6 }
 0x102   : > { %v753_v46 = vsel %vm741_vm10, %v748_v35, %v752_v32  ;;  %v815_v49 = vor.u32 %v814_v43, %v813_v41  ;;  %v756_v1 = vor.u32 %v3811_v29, %v752_v32  ;;  %v864_v6 = vrot.slane %v3807_v25, 7 }
 0x103   : > { %v732_v38 = vsel %vm714_vm9, %v691_v27, %v723_v33  ;;  %v860_v17 = vrot.slane %v3783_v4, 6  ;;  %v826_v25 = vshll.u32 %v3847_v13, 16  ;;  %v832_v32 = vrot.slane %v3777_v58, 4 }
 0x104   : > { %v3824_v44 = vpack.c.bf16 %v732_v38, %v731_v37  ;;  %v695_v45 = vpop.f32.mrb[12].mxu0  ;;  %v3842_v8 = vsel %vm809_vm11, %v3801_v20, %v815_v49  ;;  %v865_v24 = vor.u32 %v864_v6, %v863_v2 }
 0x105   : > { %v696_v47 = vadd.f32 %v3768_v40, %v695_v45  ;;  %773 = vrot.lane.b32.xlu0 %v753_v46, %s3607_s16  ;;  %v3350_v42 = vpop.f32.mrb[13].mxu0  ;;  %v862_v27 = vor.u32 %v861_v18, %v860_v17  ;;  %v828_v30 = vrot.slane %v826_v25, 4  ;;  %v834_v36 = vsel %vm831_vm2, %v832_v32, %v833_v5  ;;  %v3483_v18 = vld [vmem:[%s3743_s12 + $0x118] sm:$0xff]  }
 0x106   : > { %v698_v50 = vpop.f32.mrb[14].mxu0  ;;  %v797_v52 = vrot.slane %v3824_v44, 3  ;;  %v758_v53 = vshll.u32 %v3824_v44, 16  ;;  %v762_v61 = vshrl.u32 %v3824_v44, 16  ;;  %v875_v45 = vshrl.u32 %v3847_v13, 16 }
 0x107   : > { %v724_v54 = vmul.f32 0.01, %v696_v47  ;;  %v699_v55 = vadd.f32 %v3768_v40, %v698_v50  ;;  %v3351_v56 = vpop.f32.mrb[15].mxu0  ;;  %vm715_vm13 = vcmp.gt.f32.partialorder %v696_v47, 0.0  ;;  %v866_v31 = vsel %vm859_vm15, %v862_v27, %v865_v24 }
 0x108   : > { %v798_v59 = vsel %vm630_vm0, %v795_v23, %v797_v52  ;;  %v760_v60 = vrot.slane %v758_v53, 1  ;;  %v817_v11 = vrot.slane %v762_v61, 3  ;;  %v818_v12 = vrot.slane %v758_v53, 4 }
 0x109   : > { %vm716_vm14 = vcmp.gt.f32.partialorder %v699_v55, 0.0  ;;  %v725_v62 = vmul.f32 0.01, %v699_v55  ;;  %803 = vrot.lane.b32.xlu1 %v798_v59, %s3607_s16  ;;  %v733_v40 = vsel %vm715_vm13, %v696_v47, %v724_v54  ;;  %v867_v33 = vrot.slane %v762_v61, 6 }
 0x10a   : > { %v761_v10 = vsel %vm741_vm10, %v756_v1, %v760_v60  ;;  %v819_v20 = vor.u32 %v818_v12, %v817_v11  ;;  %v764_v22 = vor.u32 %v762_v61, %v760_v60  ;;  %v868_v34 = vrot.slane %v758_v53, 7  ;;  %v3482_v12 = vld [vmem:[%s3743_s12 + $0x110] sm:$0xff]  }
 0x10b   : > { %v734_v3 = vsel %vm716_vm14, %v699_v55, %v725_v62  ;;  %v835_v47 = vrot.slane %v3824_v44, 4  ;;  %v878_v50 = vrot.slane %v826_v25, 7  ;;  %v839_v56 = vrot.slane %v3847_v13, 4 }
 0x10c   : > { %v3844_v9 = vpack.c.bf16 %v734_v3, %v733_v40  ;;  %v3859_v26 = vsel %vm809_vm11, %v815_v49, %v819_v20  ;;  %v869_v39 = vor.u32 %v868_v34, %v867_v33  ;;  %v877_v49 = vrot.slane %v875_v45, 6  ;;  %v3477_v3 = vld [vmem:[%s3743_s12 + $0x108] sm:$0xff]   ;;  %s4016_s12 = scalar_lea.vmem %s4146_s7, %s3417_s28 }
 0x10d   : > { %775 = vrot.lane.b32.xlu1 %v761_v10, %s3607_s16  ;;  %v836_v51 = vsel %vm831_vm2, %v833_v5, %v835_v47  ;;  %v787_v60 = vrot.slane %v3797_v15, 1  ;;  %v786_v61 = vrot.slane %v3777_v58, 1  ;;  %v789_v40 = vrot.slane %v3824_v44, 1 }
 0x10e   : > { %v799_v14 = vrot.slane %v3844_v9, 3  ;;  %v766_v16 = vshll.u32 %v3844_v9, 16  ;;  %v770_v19 = vshrl.u32 %v3844_v9, 16  ;;  %v870_v42 = vsel %vm859_vm15, %v865_v24, %v869_v39 }
 0x10f   : > { %v879_v54 = vor.u32 %v878_v50, %v877_v49  ;;  %v788_v63 = vsel %vm785_vm3, %v786_v61, %v787_v60  ;;  %v790_v11 = vsel %vm785_vm3, %v787_v60, %v789_v40  ;;  %v791_v17 = vrot.slane %v3844_v9, 1  ;;  %v3485_v60 = vld [vmem:[%s550_s24] sm:$0xff]   ;;  %v3486_v61 = vld [vmem:[%s550_s24 + $0x48] sm:$0xff]  }
 0x110   : > { %v800_v21 = vsel %vm630_vm0, %v797_v52, %v799_v14  ;;  %v768_v23 = vrot.slane %v766_v16, 1  ;;  %v821_v28 = vrot.slane %v770_v19, 3  ;;  %v822_v29 = vrot.slane %v766_v16, 4 }
 0x111   : > { %805 = vrot.lane.b32.xlu0 %v800_v21, %s3607_s16  ;;  %v871_v41 = vrot.slane %v770_v19, 6  ;;  %v872_v43 = vrot.slane %v766_v16, 7  ;;  %v837_v52 = vrot.slane %v3844_v9, 4  ;;  %v851_v21 = vrot.slane %v3797_v15, 6 }
 0x112   : > { %v769_v4 = vsel %vm741_vm10, %v764_v22, %v768_v23  ;;  %v823_v35 = vor.u32 %v822_v29, %v821_v28  ;;  %v772_v46 = vor.u32 %v770_v19, %v768_v23  ;;  %v850_v24 = vrot.slane %v3777_v58, 6 }
 0x113   : > { %777 = vrot.lane.b32.xlu1 %v769_v4, %s3607_s16  ;;  %v873_v48 = vor.u32 %v872_v43, %v871_v41  ;;  %v838_v55 = vsel %vm831_vm2, %v835_v47, %v837_v52  ;;  %v840_v59 = vsel %vm831_vm2, %v837_v52, %v839_v56  ;;  %v891_v34 = vrot.slane %v3797_v15, 7 }
 0x114   : > { %v3870_v37 = vsel %vm809_vm11, %v819_v20, %v823_v35  ;;  %v3873_v38 = vsel %vm809_vm11, %v823_v35, %v828_v30  ;;  %v792_v20 = vsel %vm785_vm3, %v789_v40, %v791_v17  ;;  %v852_v4 = vsel %vm849_vm5, %v850_v24, %v851_v21  ;;  %v3493_v40 = vld [vmem:[%s550_s24 + $0x20] sm:$0xff]  }
 0x115   : > { %881 = vrot.lane.b32.xlu0 %v866_v31, %s3607_s16  ;;  %v874_v53 = vsel %vm859_vm15, %v869_v39, %v873_v48  ;;  %v880_v57 = vsel %vm859_vm15, %v873_v48, %v879_v54  ;;  %v853_v31 = vrot.slane %v3824_v44, 6  ;;  %v890_v39 = vrot.slane %v3777_v58, 7 }
 0x116   : > { %v855_v41 = vrot.slane %v3844_v9, 6  ;;  %v893_v48 = vrot.slane %v3824_v44, 7  ;;  %v895_v49 = vrot.slane %v3844_v9, 7  ;;  %v857_v50 = vrot.slane %v3847_v13, 6 }
 0x117   : > { %841 = vrot.lane.b32.xlu1 %v834_v36, %s3607_s16  ;;  %v854_v36 = vsel %vm849_vm5, %v851_v21, %v853_v31 }
 0x119   : > { %807 = vrot.lane.b32.xlu0 %v799_v14, %s3607_s16 }
 0x11b   : > { %779 = vrot.lane.b32.xlu1 %v772_v46, %s3607_s16  ;;  %v892_v46 = vsel %vm889_vm6, %v890_v39, %v891_v34 }
 0x11d   : > { %883 = vrot.lane.b32.xlu0 %v870_v42, %s3607_s16 }
 0x11f   : > { %843 = vrot.lane.b32.xlu1 %v836_v51, %s3607_s16 }
 0x121   : > { %885 = vrot.lane.b32.xlu0 %v874_v53, %s3607_s16  ;;  %v894_v53 = vsel %vm889_vm6, %v891_v34, %v893_v48 }
 0x123   : > { %845 = vrot.lane.b32.xlu1 %v838_v55, %s3607_s16  ;;  %v897_v55 = vrot.slane %v3847_v13, 7  ;;  %v3487_v13 = vld [vmem:[%s550_s24 + $0x8] sm:$0xff]  }
 0x125   : > { %887 = vrot.lane.b32.xlu0 %v880_v57, %s3607_s16  ;;  %v898_v57 = vsel %vm889_vm6, %v895_v49, %v897_v55 }
 0x127   : > { %847 = vrot.lane.b32.xlu1 %v840_v59, %s3607_s16 }
 0x173   : > { %v802_v62 = vpop.permute.xlu0 %801 }
 0x174   : > { %v914_v1 = vsel %vm899_vm4, %v788_v63, %v802_v62  ;;  %v3488_v62 = vld [vmem:[%s550_s24 + $0x50] sm:$0xff]  }
 0x175   : > { %1299 = vmatprep.mubr.bf16.mxu1 %v914_v1  ;;  %v3489_v63 = vld [vmem:[%s550_s24 + $0x10] sm:$0xff]   ;;  %v3490_v1 = vld [vmem:[%s550_s24 + $0x58] sm:$0xff]  }
 0x177   : > { %v774_v2 = vpop.permute.xlu0 %773 }
 0x178   : > { %v901_v6 = vsel %vm899_vm4, %v3777_v58, %v774_v2  ;;  %v856_v58 = vsel %vm849_vm5, %v853_v31, %v855_v41  ;;  %v3492_v2 = vld [vmem:[%s550_s24 + $0x60] sm:$0xff]  }
 0x179   : > { %1300 = vmatmul.mubr.bf16.vlgmr.msra.gmra.mrb[4].mxu1 %v901_v6  ;;  %v3495_v6 = vld [vmem:[%s550_s24 + $0x28] sm:$0xff]  }
 0x17a   : > { %3357 = vmatpush3.bf16.msra.mxu1 %v3790_v7 }
 0x17b   : > { %v804_v10 = vpop.permute.xlu1 %803  ;;  %3358 = vmatprep.subr.bf16.mxu1 %v3477_v3 }
 0x17c   : > { %v918_v14 = vsel %vm899_vm4, %v790_v11, %v804_v10  ;;  %v3496_v10 = vld [vmem:[%s550_s24 + $0x70] sm:$0xff]  }
 0x17d   : > { %1307 = vmatprep.mubr.bf16.mxu1 %v918_v14  ;;  %v3497_v11 = vld [vmem:[%s550_s24 + $0x30] sm:$0xff]   ;;  %v3499_v14 = vld [vmem:[%s550_s24 + $0x38] sm:$0xff]  }
 0x17e   : > { %3359 = vmatpush3.bf16.msra.mxu1 %v3477_v3  ;;  %v3494_v3 = vld [vmem:[%s550_s24 + $0x68] sm:$0xff]  }
 0x17f   : > { %v776_v16 = vpop.permute.xlu1 %775  ;;  %3360 = vmatprep.subr.bf16.mxu1 %v3482_v12 }
 0x180   : > { %v904_v19 = vsel %vm899_vm4, %v3797_v15, %v776_v16 }
 0x181   : > { %1308 = vmatmul.mubr.bf16.gmra.mrb[8].mxu1 %v904_v19 }
 0x182   : > { %3361 = vmatpush3.bf16.msra.mxu1 %v3482_v12  ;;  %v3498_v12 = vld [vmem:[%s550_s24 + $0x78] sm:$0xff]  }
 0x183   : > { %v806_v7 = vpop.permute.xlu0 %805  ;;  %3362 = vmatprep.subr.bf16.mxu1 %v3483_v18 }
 0x184   : > { %v922_v22 = vsel %vm899_vm4, %v792_v20, %v806_v7 }
 0x185   : > { %1315 = vmatprep.mubr.bf16.mxu1 %v922_v22  ;;  %v778_v23 = vpop.permute.xlu1 %777 }
 0x186   : > { %3363 = vmatpush3.bf16.msra.mxu1 %v3483_v18  ;;  %v907_v27 = vsel %vm899_vm4, %v3824_v44, %v778_v23  ;;  %v858_v44 = vsel %vm849_vm5, %v855_v41, %v857_v50 }
 0x187   : > { %v882_v25 = vpop.permute.xlu0 %881 }
 0x188   : > { %v946_v5 = vsel %vm899_vm4, %v852_v4, %v882_v25 }
 0x189   : > { %1316 = vmatmul.mubr.bf16.gmra.mrb[12].mxu1 %v907_v27  ;;  %1364 = vmatprep.mubr.bf16.mxu0 %v946_v5  ;;  %v842_v28 = vpop.permute.xlu1 %841  ;;  %v3958_v5 = vld [vmem:[%s545_s27] ss:$0 sm:$0xff] }
 0x18a   : > { %v930_v29 = vsel %vm899_vm4, %v3842_v8, %v842_v28 }
 0x18b   : > { %v808_v30 = vpop.permute.xlu0 %807  ;;  %1365 = vmatmul.mubr.bf16.vlgmr.msra.gmra.mrb[16].mxu0 %v930_v29 }
 0x18c   : > { %v926_v32 = vsel %vm899_vm4, %v791_v17, %v808_v30 }
 0x18d   : > { %1323 = vmatprep.mubr.bf16.mxu1 %v926_v32  ;;  %v780_v33 = vpop.permute.xlu1 %779 }
 0x18e   : > { %v910_v8 = vsel %vm899_vm4, %v3844_v9, %v780_v33 }
 0x18f   : > { %v884_v35 = vpop.permute.xlu0 %883 }
 0x190   : > { %v950_v43 = vsel %vm899_vm4, %v854_v36, %v884_v35 }
 0x191   : > { %1324 = vmatmul.mubr.bf16.gmra.mrb[16].mxu1 %v910_v8  ;;  %1372 = vmatprep.mubr.bf16.mxu0 %v950_v43  ;;  %v844_v45 = vpop.permute.xlu1 %843 }
 0x192   : > { %3364 = vmatprep.mubr.msk.bf16.mxu1 %vm899_vm4, %v892_v46  ;;  %v934_v15 = vsel %vm899_vm4, %v3859_v26, %v844_v45  ;;  %v896_v26 = vsel %vm889_vm6, %v893_v48, %v895_v49 }
 0x193   : > { %v886_v47 = vpop.permute.xlu0 %885  ;;  %1373 = vmatmul.mubr.bf16.gmra.mrb[20].mxu0 %v934_v15 }
 0x194   : > { %v954_v42 = vsel %vm899_vm4, %v856_v58, %v886_v47 }
 0x195   : > { %1380 = vmatprep.mubr.bf16.mxu0 %v954_v42  ;;  %v846_v51 = vpop.permute.xlu1 %845 }
 0x196   : > { %v938_v54 = vsel %vm899_vm4, %v3870_v37, %v846_v51  ;;  %v3484_v37 = vld [vmem:[%s550_s24 + $0x40] sm:$0xff]  }
 0x197   : > { %v888_v52 = vpop.permute.xlu0 %887  ;;  %3186 = vmatprep.subr.bf16.mxu0 %v3484_v37 }
 0x198   : > { %v958_v9 = vsel %vm899_vm4, %v858_v44, %v888_v52  ;;  %3187 = vmatpush3.bf16.msra.mxu0 %v3485_v60 }
 0x199   : > { %3365 = vmatmul.mubr.msk.bf16.vlgmr.msra.gmra.mrb[20].mxu1 %vm899_vm4, %v894_v53  ;;  %v848_v56 = vpop.permute.xlu1 %847  ;;  %3188 = vmatprep.subr.bf16.mxu0 %v3486_v61 }
 0x19a   : > { %3368 = vmatprep.mubr.msk.bf16.mxu1 %vm899_vm4, %v896_v26  ;;  %v942_v59 = vsel %vm899_vm4, %v3873_v38, %v848_v56  ;;  %v3491_v38 = vld [vmem:[%s550_s24 + $0x18] sm:$0xff]  }
 0x19b   : > { %1381 = vmatmul.mubr.bf16.gmra.mrb[24].mxu0 %v938_v54 }
 0x19c   : > { %1388 = vmatprep.mubr.bf16.mxu0 %v958_v9  ;;  %3189 = vmatpush3.bf16.msra.mxu0 %v3487_v13 }
 0x19d   : > { %3190 = vmatprep.subr.bf16.mxu0 %v3488_v62 }
 0x1a0   : > { %3191 = vmatpush3.bf16.msra.mxu0 %v3489_v63 }
 0x1a1   : > { %3369 = vmatmul.mubr.msk.bf16.gmra.mrb[24].mxu1 %vm899_vm4, %v898_v57  ;;  %3192 = vmatprep.subr.bf16.mxu0 %v3490_v1 }
 0x1a3   : > { %1389 = vmatmul.mubr.bf16.gmra.mrb[28].mxu0 %v942_v59 }
 0x1a4   : > { %3193 = vmatpush3.bf16.msra.mxu0 %v3491_v38 }
 0x1a5   : > { %3194 = vmatprep.subr.bf16.mxu0 %v3492_v2 }
 0x1a8   : > { %3195 = vmatpush3.bf16.msra.mxu0 %v3493_v40 }
 0x1a9   : > { %3196 = vmatprep.subr.bf16.mxu0 %v3494_v3 }
 0x1ac   : > { %3197 = vmatpush3.bf16.msra.mxu0 %v3495_v6 }
 0x1ad   : > { %3198 = vmatprep.subr.bf16.mxu0 %v3496_v10 }
 0x1b0   : > { %3199 = vmatpush3.bf16.msra.mxu0 %v3497_v11 }
 0x1b1   : > { %3200 = vmatprep.subr.bf16.mxu0 %v3498_v12 }
 0x1b4   : > { %3201 = vmatpush3.bf16.msra.mxu0 %v3499_v14 }
 0x24c   : > { %v3114_v16 = vpop.f32.mrb[4].mxu1 }
 0x24d   : > { %v3115_v17 = vpop.f32.mrb[5].mxu1 }
 0x24e   : > { %v3116_v18 = vadd.f32 %v3115_v17, %v3114_v16  ;;  %v3117_v19 = vpop.f32.mrb[6].mxu1 }
 0x24f   : > { %v3118_v7 = vpop.f32.mrb[7].mxu1 }
 0x250   : > { %v3119_v20 = vadd.f32 %v3118_v7, %v3117_v19  ;;  %v1302_v34 = vadd.f32 %v3116_v18, %v3958_v5 }
 0x252   : > { %v1305_v8 = vadd.f32 %v3119_v20, %v3958_v5 }
 0x254   : > { %v3120_v21 = vpop.f32.mrb[8].mxu1 }
 0x255   : > { %v3121_v22 = vpop.f32.mrb[9].mxu1 }
 0x256   : > { %v3122_v23 = vadd.f32 %v3121_v22, %v3120_v21  ;;  %v3123_v24 = vpop.f32.mrb[10].mxu1 }
 0x257   : > { %v3124_v25 = vpop.f32.mrb[11].mxu1 }
 0x258   : > { %v3125_v4 = vadd.f32 %v3124_v25, %v3123_v24  ;;  %v1310_v51 = vadd.f32 %v3122_v23, %v3958_v5 }
 0x25a   : > { %v1313_v44 = vadd.f32 %v3125_v4, %v3958_v5 }
 0x25c   : > { %v3126_v27 = vpop.f32.mrb[12].mxu1 }
 0x25d   : > { %v3127_v28 = vpop.f32.mrb[13].mxu1 }
 0x25e   : > { %v3128_v29 = vadd.f32 %v3127_v28, %v3126_v27  ;;  %v3129_v30 = vpop.f32.mrb[14].mxu1  ;;  %v3154_v31 = vpop.f32.mrb[16].mxu0 }
 0x25f   : > { %v3130_v32 = vpop.f32.mrb[15].mxu1  ;;  %v3155_v33 = vpop.f32.mrb[17].mxu0 }
 0x260   : > { %v3131_v35 = vadd.f32 %v3130_v32, %v3129_v30  ;;  %v3156_v36 = vadd.f32 %v3155_v33, %v3154_v31  ;;  %v3157_v39 = vpop.f32.mrb[18].mxu0  ;;  %v1318_v10 = vadd.f32 %v3128_v29, %v3958_v5 }
 0x261   : > { %v3158_v41 = vpop.f32.mrb[19].mxu0 }
 0x262   : > { %v3159_v43 = vadd.f32 %v3158_v41, %v3157_v39  ;;  %v1367_v45 = vadd.f32 %v3156_v36, %v1302_v34  ;;  %v1321_v14 = vadd.f32 %v3131_v35, %v3958_v5 }
 0x264   : > { %v3132_v46 = vpop.f32.mrb[16].mxu1  ;;  %v1370_v15 = vadd.f32 %v3159_v43, %v1305_v8 }
 0x265   : > { %v3133_v47 = vpop.f32.mrb[17].mxu1 }
 0x266   : > { %v3134_v58 = vadd.f32 %v3133_v47, %v3132_v46  ;;  %v3135_v42 = vpop.f32.mrb[18].mxu1  ;;  %v3160_v48 = vpop.f32.mrb[20].mxu0 }
 0x267   : > { %v3136_v49 = vpop.f32.mrb[19].mxu1  ;;  %v3161_v50 = vpop.f32.mrb[21].mxu0 }
 0x268   : > { %v3137_v52 = vadd.f32 %v3136_v49, %v3135_v42  ;;  %v3162_v53 = vadd.f32 %v3161_v50, %v3160_v48  ;;  %v3163_v26 = vpop.f32.mrb[22].mxu0  ;;  %v1326_v32 = vadd.f32 %v3134_v58, %v3958_v5 }
 0x269   : > { %v3164_v54 = vpop.f32.mrb[23].mxu0 }
 0x26a   : > { %v3165_v9 = vadd.f32 %v3164_v54, %v3163_v26  ;;  %v1375_v55 = vadd.f32 %v3162_v53, %v1310_v51  ;;  %v1329_v48 = vadd.f32 %v3137_v52, %v3958_v5 }
 0x26c   : > { %v3366_v56 = vpop.f32.mrb[20].mxu1  ;;  %v1378_v57 = vadd.f32 %v3165_v9, %v1313_v44 }
 0x26d   : > { %v1440_v59 = vadd.f32 %v3366_v56, %v1375_v55  ;;  %v1431_v37 = vpop.f32.mrb[21].mxu1 }
 0x26e   : > { %v1432_v60 = vadd.f32 %v1431_v37, %v1367_v45  ;;  %v3166_v61 = vpop.f32.mrb[24].mxu0  ;;  %v3367_v13 = vpop.f32.mrb[22].mxu1 }
 0x26f   : > { %v1472_v62 = vmul.f32 0.01, %v1440_v59  ;;  %v1443_v63 = vadd.f32 %v3367_v13, %v1378_v57  ;;  %v3167_v1 = vpop.f32.mrb[25].mxu0  ;;  %v1434_v38 = vpop.f32.mrb[23].mxu1  ;;  %vm1464_vm7 = vcmp.gt.f32.partialorder %v1440_v59, 0.0 }
 0x270   : > { %v1470_v2 = vmul.f32 0.01, %v1432_v60  ;;  %v3168_v40 = vadd.f32 %v3167_v1, %v3166_v61  ;;  %v1435_v3 = vadd.f32 %v1434_v38, %v1370_v15  ;;  %v3169_v6 = vpop.f32.mrb[26].mxu0  ;;  %vm1462_vm8 = vcmp.gt.f32.partialorder %v1432_v60, 0.0 }
 0x271   : > { %vm1465_vm9 = vcmp.gt.f32.partialorder %v1443_v63, 0.0  ;;  %v1473_v11 = vmul.f32 0.01, %v1443_v63  ;;  %v3170_v12 = vpop.f32.mrb[27].mxu0  ;;  %v1480_v18 = vsel %vm1464_vm7, %v1440_v59, %v1472_v62 }
 0x272   : > { %vm1463_vm12 = vcmp.gt.f32.partialorder %v1435_v3, 0.0  ;;  %v1471_v16 = vmul.f32 0.01, %v1435_v3  ;;  %v3171_v17 = vadd.f32 %v3170_v12, %v3169_v6  ;;  %v1383_v7 = vadd.f32 %v3168_v40, %v1318_v10 }
 0x273   : > { %v1481_v19 = vsel %vm1465_vm9, %v1443_v63, %v1473_v11  ;;  %v1478_v20 = vsel %vm1462_vm8, %v1432_v60, %v1470_v2 }
 0x274   : > { %v3966_v21 = vpack.c.bf16 %v1481_v19, %v1480_v18  ;;  %v1479_v22 = vsel %vm1463_vm12, %v1435_v3, %v1471_v16  ;;  %v3370_v23 = vpop.f32.mrb[24].mxu1  ;;  %v1386_v24 = vadd.f32 %v3171_v17, %v1321_v14 }
 0x275   : > { %v3968_v25 = vpack.c.bf16 %v1479_v22, %v1478_v20  ;;  %v1447_v4 = vpop.f32.mrb[25].mxu1 }
 0x276   : > { %v1448_v27 = vadd.f32 %v1447_v4, %v1383_v7  ;;  %v3172_v28 = vpop.f32.mrb[28].mxu0  ;;  %v3371_v29 = vpop.f32.mrb[26].mxu1  ;;  %v1498_v30 = vshll.u32 %v3966_v21, 16  ;;  %v1502_v31 = vshrl.u32 %v3966_v21, 16 }
 0x277   : > { %v3173_v33 = vpop.f32.mrb[29].mxu0  ;;  %v1450_v34 = vpop.f32.mrb[27].mxu1  ;;  %v1491_v35 = vshrl.u32 %v3968_v25, 16  ;;  %v1493_v36 = vshll.u32 %v3968_v25, 16  ;;  %v1533_v4 = vrot.slane %v3968_v25, 3 }
 0x278   : > { %vm1466_vm13 = vcmp.gt.f32.partialorder %v1448_v27, 0.0  ;;  %v1474_v39 = vmul.f32 0.01, %v1448_v27  ;;  %v3174_v41 = vadd.f32 %v3173_v33, %v3172_v28  ;;  %v1451_v8 = vadd.f32 %v1450_v34, %v1386_v24  ;;  %v3175_v43 = vpop.f32.mrb[30].mxu0 }
 0x279   : > { %v3176_v45 = vpop.f32.mrb[31].mxu0  ;;  %v1540_v46 = vrot.slane %v1491_v35, 3  ;;  %v1541_v15 = vrot.slane %v1493_v36, 4  ;;  %v1543_v47 = vrot.slane %v1502_v31, 3  ;;  %v1544_v42 = vrot.slane %v1498_v30, 4 }
 0x27a   : > { %v1391_v49 = vadd.f32 %v3174_v41, %v1326_v32  ;;  %vm1467_vm14 = vcmp.gt.f32.partialorder %v1451_v8, 0.0  ;;  %v1475_v58 = vmul.f32 0.01, %v1451_v8  ;;  %v3177_v50 = vadd.f32 %v3176_v45, %v3175_v43 }
 0x27b   : > { %v1542_v51 = vor.u32 %v1541_v15, %v1540_v46  ;;  %v1545_v53 = vor.u32 %v1544_v42, %v1543_v47  ;;  %v1495_v26 = vrot.slane %v1493_v36, 1  ;;  %v1482_v54 = vsel %vm1466_vm13, %v1448_v27, %v1474_v39 }
 0x27c   : > { %v1456_v44 = vadd.f32 %v3370_v23, %v1391_v49  ;;  %v1483_v9 = vsel %vm1467_vm14, %v1451_v8, %v1475_v58  ;;  %v1500_v55 = vrot.slane %v1498_v30, 1  ;;  %v1394_v57 = vadd.f32 %v3177_v50, %v1329_v48  ;;  %v3500_v49 = vld [vmem:[%s4016_s12 + $0x40] sm:$0xff]  }
 0x27d   : > { %v3977_v56 = vpack.c.bf16 %v1483_v9, %v1482_v54  ;;  %v1546_v59 = vsel %vm809_vm11, %v1542_v51, %v1545_v53  ;;  %v1496_v37 = vor.u32 %v1495_v26, %v1491_v35  ;;  %v1534_v27 = vrot.slane %v3966_v21, 3  ;;  %v3501_v58 = vld [vmem:[%s4016_s12] sm:$0xff]   ;;  %3226 = vmatprep.subr.bf16.mxu1 %v3500_v49  ;;  %v3505_v26 = vld [vmem:[%s4016_s12 + $0x8] sm:$0xff]   ;;  %v3508_v9 = vld [vmem:[%s4016_s12 + $0x50] sm:$0xff]  }
 0x27e   : > { %v1476_v60 = vmul.f32 0.01, %v1456_v44  ;;  %1555 = vrot.lane.b32.xlu0 %v1546_v59, %s3607_s16  ;;  %v1459_v5 = vadd.f32 %v3371_v29, %v1394_v57  ;;  %vm1468_vm15 = vcmp.gt.f32.partialorder %v1456_v44, 0.0  ;;  %v1504_v62 = vor.u32 %v1502_v31, %v1500_v55  ;;  %v3502_v50 = vld [vmem:[%s4016_s12 + $0xc0] sm:$0xff]   ;;  %3227 = vmatpush3.bf16.msra.mxu1 %v3501_v58  ;;  %v3506_v54 = vld [vmem:[%s4016_s12 + $0xc8] sm:$0xff]   ;;  %v3511_v57 = vld [vmem:[%s4016_s12 + $0x90] sm:$0xff]  }
 0x27f   : > { %v1501_v52 = vsel %vm741_vm10, %v1496_v37, %v1500_v55  ;;  %v1506_v61 = vshll.u32 %v3977_v56, 16  ;;  %v1510_v13 = vshrl.u32 %v3977_v56, 16  ;;  %v1535_v29 = vsel %vm630_vm0, %v1533_v4, %v1534_v27  ;;  %v3503_v51 = vld [vmem:[%s4016_s12 + $0x80] sm:$0xff]   ;;  %3248 = vmatprep.subr.bf16.mxu0 %v3502_v50  ;;  %v3509_v55 = vld [vmem:[%s4016_s12 + $0x10] sm:$0xff]   ;;  %v3512_v59 = vld [vmem:[%s4016_s12 + $0x58] sm:$0xff]  }
 0x280   : > { %1521 = vrot.lane.b32.xlu1 %v1501_v52, %s3607_s16  ;;  %vm1469_vm2 = vcmp.gt.f32.partialorder %v1459_v5, 0.0  ;;  %v1477_v63 = vmul.f32 0.01, %v1459_v5  ;;  %v1484_v40 = vsel %vm1468_vm15, %v1456_v44, %v1476_v60  ;;  %v1536_v33 = vrot.slane %v3977_v56, 3  ;;  %v3507_v44 = vld [vmem:[%s4016_s12 + $0x88] sm:$0xff]   ;;  %v3513_v37 = vld [vmem:[%s4016_s12 + $0x18] sm:$0xff]  }
 0x281   : > { %v1508_v1 = vrot.slane %v1506_v61, 1  ;;  %v1547_v38 = vrot.slane %v1510_v13, 3  ;;  %v1548_v2 = vrot.slane %v1506_v61, 4  ;;  %v3514_v60 = vld [vmem:[%s4016_s12 + $0xd8] sm:$0xff]   ;;  %v3516_v52 = vld [vmem:[%s4016_s12 + $0x60] sm:$0xff]  }
 0x282   : > { %v1485_v3 = vsel %vm1469_vm2, %v1459_v5, %v1477_v63  ;;  %v1537_v36 = vsel %vm630_vm0, %v1534_v27, %v1536_v33  ;;  %v3515_v5 = vld [vmem:[%s4016_s12 + $0x98] sm:$0xff]   ;;  %v3517_v61 = vld [vmem:[%s4016_s12 + $0x20] sm:$0xff]   ;;  %v3520_v63 = vld [vmem:[%s4016_s12 + $0x68] sm:$0xff]  }
 0x283   : > { %v1509_v6 = vsel %vm741_vm10, %v1504_v62, %v1508_v1  ;;  %v1489_v10 = vpack.c.bf16 %v1485_v3, %v1484_v40  ;;  %v1549_v11 = vor.u32 %v1548_v2, %v1547_v38  ;;  %v1512_v17 = vor.u32 %v1510_v13, %v1508_v1  ;;  %v3518_v13 = vld [vmem:[%s4016_s12 + $0xe0] sm:$0xff]   ;;  %v3521_v1 = vld [vmem:[%s4016_s12 + $0x28] sm:$0xff]   ;;  %v3524_v40 = vld [vmem:[%s4016_s12 + $0x70] sm:$0xff]  }
 0x284   : > { %1523 = vrot.lane.b32.xlu1 %v1509_v6, %s3607_s16  ;;  %v3519_v62 = vld [vmem:[%s4016_s12 + $0xa0] sm:$0xff]   ;;  %v3522_v38 = vld [vmem:[%s4016_s12 + $0xe8] sm:$0xff]   ;;  %v3525_v3 = vld [vmem:[%s4016_s12 + $0x30] sm:$0xff]  }
 0x285   : > { %v1550_v12 = vsel %vm809_vm11, %v1545_v53, %v1549_v11  ;;  %v1514_v14 = vshll.u32 %v1489_v10, 16  ;;  %v1518_v16 = vshrl.u32 %v1489_v10, 16  ;;  %v1538_v8 = vrot.slane %v1489_v10, 3  ;;  %v3504_v53 = vld [vmem:[%s4016_s12 + $0x48] sm:$0xff]   ;;  %v3526_v6 = vld [vmem:[%s4016_s12 + $0xf0] sm:$0xff]  }
 0x286   : > { %1557 = vrot.lane.b32.xlu0 %v1550_v12, %s3607_s16  ;;  %3228 = vmatprep.subr.bf16.mxu1 %v3504_v53  ;;  %v3523_v2 = vld [vmem:[%s4016_s12 + $0xa8] sm:$0xff]   ;;  %v3529_v12 = vld [vmem:[%s4016_s12 + $0x38] sm:$0xff]  }
 0x287   : > { %v1516_v18 = vrot.slane %v1514_v14, 1  ;;  %v1551_v19 = vrot.slane %v1518_v16, 3  ;;  %v1552_v7 = vrot.slane %v1514_v14, 4  ;;  %v1539_v45 = vsel %vm630_vm0, %v1536_v33, %v1538_v8  ;;  %3229 = vmatpush3.bf16.msra.mxu1 %v3505_v26  ;;  %v3530_v14 = vld [vmem:[%s4016_s12 + $0xf8] sm:$0xff]  }
 0x288   : > { %3230 = vmatprep.subr.bf16.mxu1 %v3508_v9 }
 0x289   : > { %v1517_v20 = vsel %vm741_vm10, %v1512_v17, %v1516_v18  ;;  %v1553_v22 = vor.u32 %v1552_v7, %v1551_v19  ;;  %v1520_v24 = vor.u32 %v1518_v16, %v1516_v18  ;;  %v3531_v16 = vld [vmem:[%s4016_s12 + $0xb8] sm:$0xff]   ;;  %v3532_v17 = vld [vmem:[%s4016_s12 + $0x140] sm:$0xff]  }
 0x28a   : > { %1525 = vrot.lane.b32.xlu1 %v1517_v20, %s3607_s16  ;;  %v3534_v18 = vld [vmem:[%s4016_s12 + $0x1c0] sm:$0xff]  }
 0x28b   : > { %v1554_v23 = vsel %vm809_vm11, %v1549_v11, %v1553_v22  ;;  %3231 = vmatpush3.bf16.msra.mxu1 %v3509_v55  ;;  %v3528_v11 = vld [vmem:[%s4016_s12 + $0x78] sm:$0xff]   ;;  %v2987_v7 = vld [vmem:[%s553_s15] ss:$0 sm:$0xff] }
 0x28c   : > { %1559 = vrot.lane.b32.xlu0 %v1554_v23, %s3607_s16  ;;  %3232 = vmatprep.subr.bf16.mxu1 %v3512_v59  ;;  %v3533_v59 = vld [vmem:[%s4016_s12 + $0x100] sm:$0xff]  }
 0x28e   : > { %1527 = vrot.lane.b32.xlu1 %v1520_v24, %s3607_s16 }
 0x28f   : > { %3233 = vmatpush3.bf16.msra.mxu1 %v3513_v37 }
 0x290   : > { %1561 = vrot.lane.b32.xlu0 %v1553_v22, %s3607_s16  ;;  %3234 = vmatprep.subr.bf16.mxu1 %v3516_v52  ;;  %s3090_s16 = sshll.u32 %s4156_s17, 6 }
 0x291   : > { %s566_s23 = scalar_lea.vmem %s4148_s9, %s3090_s16 }
 0x293   : > { %3235 = vmatpush3.bf16.msra.mxu1 %v3517_v61 }
 0x294   : > { %3236 = vmatprep.subr.bf16.mxu1 %v3520_v63 }
 0x297   : > { %3237 = vmatpush3.bf16.msra.mxu1 %v3521_v1  ;;  %v3538_v1 = vld [vmem:[%s4016_s12 + $0x1c8] sm:$0xff]  }
 0x298   : > { %3238 = vmatprep.subr.bf16.mxu1 %v3524_v40  ;;  %v3539_v40 = vld [vmem:[%s4016_s12 + $0x188] sm:$0xff]  }
 0x29b   : > { %3239 = vmatpush3.bf16.msra.mxu1 %v3525_v3 }
 0x29c   : > { %3240 = vmatprep.subr.bf16.mxu1 %v3528_v11  ;;  %v3541_v11 = vld [vmem:[%s4016_s12 + $0x110] sm:$0xff]  }
 0x29f   : > { %3241 = vmatpush3.bf16.msra.mxu1 %v3529_v12  ;;  %v3544_v12 = vld [vmem:[%s4016_s12 + $0x158] sm:$0xff]  }
 0x2a0   : > { %3270 = vmatprep.subr.bf16.mxu1 %v3532_v17  ;;  %v3545_v17 = vld [vmem:[%s4016_s12 + $0x118] sm:$0xff]  }
 0x2f0   : > { %v1556_v28 = vpop.permute.xlu0 %1555 }
 0x2f1   : > { %v1577_v30 = vsel %vm899_vm4, %v1535_v29, %v1556_v28 }
 0x2f2   : > { %v1522_v31 = vpop.permute.xlu1 %1521  ;;  %1758 = vmatprep.mubr.bf16.mxu0 %v1577_v30 }
 0x2f3   : > { %v1564_v32 = vsel %vm899_vm4, %v3968_v25, %v1522_v31 }
 0x2f4   : > { %1759 = vmatmul.mubr.bf16.vlgmr.msra.gmra.mrb[32].mxu0 %v1564_v32 }
 0x2f5   : > { %3249 = vmatpush3.bf16.msra.mxu0 %v3503_v51 }
 0x2f6   : > { %v1524_v34 = vpop.permute.xlu1 %1523  ;;  %3250 = vmatprep.subr.bf16.mxu0 %v3506_v54 }
 0x2f7   : > { %v1567_v41 = vsel %vm899_vm4, %v3966_v21, %v1524_v34 }
 0x2f8   : > { %v1558_v35 = vpop.permute.xlu0 %1557 }
 0x2f9   : > { %v1581_v39 = vsel %vm899_vm4, %v1537_v36, %v1558_v35  ;;  %3251 = vmatpush3.bf16.msra.mxu0 %v3507_v44 }
 0x2fa   : > { %1766 = vmatprep.mubr.bf16.mxu0 %v1581_v39 }
 0x2fc   : > { %1767 = vmatmul.mubr.bf16.gmra.mrb[36].mxu0 %v1567_v41  ;;  %v1526_v25 = vpop.permute.xlu1 %1525 }
 0x2fd   : > { %v1570_v47 = vsel %vm899_vm4, %v3977_v56, %v1526_v25  ;;  %v3510_v56 = vld [vmem:[%s4016_s12 + $0xd0] sm:$0xff]  }
 0x2fe   : > { %v1560_v43 = vpop.permute.xlu0 %1559  ;;  %3252 = vmatprep.subr.bf16.mxu0 %v3510_v56 }
 0x2ff   : > { %v1585_v46 = vsel %vm899_vm4, %v1539_v45, %v1560_v43  ;;  %3253 = vmatpush3.bf16.msra.mxu0 %v3511_v57 }
 0x300   : > { %1774 = vmatprep.mubr.bf16.mxu0 %v1585_v46  ;;  %v1528_v48 = vpop.permute.xlu1 %1527  ;;  %3254 = vmatprep.subr.bf16.mxu0 %v3514_v60 }
 0x301   : > { %v1573_v21 = vsel %vm899_vm4, %v1489_v10, %v1528_v48  ;;  %v3527_v10 = vld [vmem:[%s4016_s12 + $0xb0] sm:$0xff]  }
 0x302   : > { %v1562_v15 = vpop.permute.xlu0 %1561 }
 0x303   : > { %v1589_v42 = vsel %vm899_vm4, %v1538_v8, %v1562_v15  ;;  %3255 = vmatpush3.bf16.msra.mxu0 %v3515_v5 }
 0x304   : > { %1775 = vmatmul.mubr.bf16.gmra.mrb[40].mxu0 %v1570_v47  ;;  %3256 = vmatprep.subr.bf16.mxu0 %v3518_v13  ;;  %v3535_v13 = vld [vmem:[%s4016_s12 + $0x180] sm:$0xff]  }
 0x305   : > { %1782 = vmatprep.mubr.bf16.mxu0 %v1589_v42 }
 0x307   : > { %3257 = vmatpush3.bf16.msra.mxu0 %v3519_v62  ;;  %v3536_v62 = vld [vmem:[%s4016_s12 + $0x148] sm:$0xff]  }
 0x308   : > { %3258 = vmatprep.subr.bf16.mxu0 %v3522_v38  ;;  %v3537_v38 = vld [vmem:[%s4016_s12 + $0x108] sm:$0xff]  }
 0x30b   : > { %3259 = vmatpush3.bf16.msra.mxu0 %v3523_v2  ;;  %v3540_v2 = vld [vmem:[%s4016_s12 + $0x150] sm:$0xff]  }
 0x30c   : > { %1783 = vmatmul.mubr.bf16.gmra.mrb[44].mxu0 %v1573_v21  ;;  %3260 = vmatprep.subr.bf16.mxu0 %v3526_v6  ;;  %v3542_v6 = vld [vmem:[%s4016_s12 + $0x1d0] sm:$0xff]  }
 0x30f   : > { %3261 = vmatpush3.bf16.msra.mxu0 %v3527_v10 }
 0x310   : > { %3262 = vmatprep.subr.bf16.mxu0 %v3530_v14  ;;  %v3543_v14 = vld [vmem:[%s4016_s12 + $0x190] sm:$0xff]  }
 0x313   : > { %3263 = vmatpush3.bf16.msra.mxu0 %v3531_v16  ;;  %v3546_v16 = vld [vmem:[%s4016_s12 + $0x1d8] sm:$0xff]  }
 0x314   : > { %3292 = vmatprep.subr.bf16.mxu0 %v3534_v18  ;;  %v3548_v18 = vld [vmem:[%s4016_s12 + $0x160] sm:$0xff]  }
 0x3c7   : > { %v3202_v19 = vpop.f32.mrb[32].mxu0 }
 0x3c8   : > { %v3203_v20 = vpop.f32.mrb[33].mxu0 }
 0x3c9   : > { %v3204_v22 = vadd.f32 %v3203_v20, %v3202_v19  ;;  %v3205_v23 = vpop.f32.mrb[34].mxu0  ;;  %v3547_v19 = vld [vmem:[%s4016_s12 + $0x198] sm:$0xff]   ;;  %v3549_v20 = vld [vmem:[%s4016_s12 + $0x120] sm:$0xff]  }
 0x3ca   : > { %v3206_v24 = vpop.f32.mrb[35].mxu0 }
 0x3cb   : > { %v1761_v4 = vadd.f32 %v3204_v22, %v2987_v7  ;;  %v3207_v27 = vadd.f32 %v3206_v24, %v3205_v23  ;;  %v3552_v22 = vld [vmem:[%s4016_s12 + $0x168] sm:$0xff]   ;;  %v3551_v23 = vld [vmem:[%s4016_s12 + $0x1a0] sm:$0xff]  }
 0x3cc   : > { %v3554_v24 = vld [vmem:[%s4016_s12 + $0x1e8] sm:$0xff]  }
 0x3cd   : > { %vm1790_vm0 = vcmp.gt.f32.partialorder %v1761_v4, 0.0  ;;  %v1797_v28 = vmul.f32 0.01, %v1761_v4  ;;  %v1764_v29 = vadd.f32 %v3207_v27, %v2987_v7  ;;  %v3556_v27 = vld [vmem:[%s4016_s12 + $0x170] sm:$0xff]  }
 0x3cf   : > { %v1804_v30 = vsel %vm1790_vm0, %v1761_v4, %v1797_v28  ;;  %vm1791_vm10 = vcmp.gt.f32.partialorder %v1764_v29, 0.0  ;;  %v1798_v31 = vmul.f32 0.01, %v1764_v29  ;;  %v3208_v32 = vpop.f32.mrb[36].mxu0  ;;  %v3553_v4 = vld [vmem:[%s4016_s12 + $0x128] sm:$0xff]  }
 0x3d0   : > { %1811 = vst [vmem:[#allocation2] sm:$0xff] %v1804_v30  ;;  %v3209_v33 = vpop.f32.mrb[37].mxu0  ;;  %v3555_v28 = vld [vmem:[%s4016_s12 + $0x1a8] sm:$0xff]   ;;  %v3557_v30 = vld [vmem:[%s4016_s12 + $0x130] sm:$0xff]  }
 0x3d1   : > { %v1805_v34 = vsel %vm1791_vm10, %v1764_v29, %v1798_v31  ;;  %v3211_v35 = vpop.f32.mrb[38].mxu0  ;;  %v3558_v29 = vld [vmem:[%s4016_s12 + $0x1f0] sm:$0xff]   ;;  %v3560_v31 = vld [vmem:[%s4016_s12 + $0x178] sm:$0xff]  }
 0x3d2   : > { %1812 = vst [vmem:[#allocation2 + $0x8] sm:$0xff] %v1805_v34  ;;  %v3212_v36 = vpop.f32.mrb[39].mxu0  ;;  %v3559_v32 = vld [vmem:[%s4016_s12 + $0x1b0] sm:$0xff]   ;;  %v3562_v33 = vld [vmem:[%s4016_s12 + $0x1f8] sm:$0xff]  }
 0x3d3   : > { %v3561_v34 = vld [vmem:[%s4016_s12 + $0x138] sm:$0xff]  }
 0x3d4   : > { %v3563_v35 = vld [vmem:[%s4016_s12 + $0x1b8] sm:$0xff]  }
 0x3d7   : > { %v3214_v39 = vpop.f32.mrb[40].mxu0 }
 0x3d8   : > { %v3215_v41 = vpop.f32.mrb[41].mxu0 }
 0x3d9   : > { %v3216_v8 = vadd.f32 %v3215_v41, %v3214_v39  ;;  %v3217_v43 = vpop.f32.mrb[42].mxu0  ;;  %v3564_v39 = vld [vmem:[%s4016_s12 + $0x200] sm:$0xff]  }
 0x3da   : > { %v3218_v45 = vpop.f32.mrb[43].mxu0 }
 0x3db   : > { %v1777_v25 = vadd.f32 %v3216_v8, %v2987_v7  ;;  %v3219_v46 = vadd.f32 %v3218_v45, %v3217_v43  ;;  %v3565_v45 = vld [vmem:[%s4016_s12 + $0x208] sm:$0xff]  }
 0x3dd   : > { %vm1794_vm11 = vcmp.gt.f32.partialorder %v1777_v25, 0.0  ;;  %v1801_v15 = vmul.f32 0.01, %v1777_v25  ;;  %v1780_v47 = vadd.f32 %v3219_v46, %v2987_v7  ;;  %v3567_v46 = vld [vmem:[%s4016_s12 + $0x218] sm:$0xff]  }
 0x3df   : > { %v1808_v42 = vsel %vm1794_vm11, %v1777_v25, %v1801_v15  ;;  %vm1795_vm3 = vcmp.gt.f32.partialorder %v1780_v47, 0.0  ;;  %v1802_v48 = vmul.f32 0.01, %v1780_v47  ;;  %v3220_v21 = vpop.f32.mrb[44].mxu0  ;;  %v3566_v25 = vld [vmem:[%s4016_s12 + $0x210] sm:$0xff]   ;;  %v3568_v15 = vld [vmem:[%s4016_s12 + $0x220] sm:$0xff]  }
 0x3e0   : > { %1815 = vst [vmem:[#allocation2 + $0x20] sm:$0xff] %v1808_v42  ;;  %v3221_v49 = vpop.f32.mrb[45].mxu0  ;;  %v3570_v42 = vld [vmem:[%s4016_s12 + $0x230] sm:$0xff]  }
 0x3e1   : > { %v1809_v58 = vsel %vm1795_vm3, %v1780_v47, %v1802_v48  ;;  %v3222_v50 = vadd.f32 %v3221_v49, %v3220_v21  ;;  %v3223_v51 = vpop.f32.mrb[46].mxu0  ;;  %v3569_v47 = vld [vmem:[%s4016_s12 + $0x228] sm:$0xff]   ;;  %v3571_v48 = vld [vmem:[%s4016_s12 + $0x238] sm:$0xff]  }
 0x3e2   : > { %1816 = vst [vmem:[#allocation2 + $0x28] sm:$0xff] %v1809_v58  ;;  %v3224_v53 = vpop.f32.mrb[47].mxu0  ;;  %v3572_v58 = vld [vmem:[%s566_s23] sm:$0xff]   ;;  %v3574_v51 = vld [vmem:[%s566_s23 + $0x10] sm:$0xff]  }
 0x3e3   : > { %v1785_v26 = vadd.f32 %v3222_v50, %v2987_v7  ;;  %v3550_v7 = vld [vmem:[%s4016_s12 + $0x1e0] sm:$0xff]   ;;  %v3573_v50 = vld [vmem:[%s566_s23 + $0x8] sm:$0xff]   ;;  %v3575_v53 = vld [vmem:[%s566_s23 + $0x18] sm:$0xff]  }
 0x3e5   : > { %vm1796_vm4 = vcmp.gt.f32.partialorder %v1785_v26, 0.0  ;;  %v1803_v54 = vmul.f32 0.01, %v1785_v26 }
 0x3e7   : > { %v1810_v44 = vsel %vm1796_vm4, %v1785_v26, %v1803_v54  ;;  %v1820_v9 = vld [vmem:[#allocation2 + $0x1] ss:$36 sm:$0x3]  ;;  %v1818_v55 = vld [vmem:[#allocation2] ss:$36 sm:$0x3] }
 0x3e8   : > { %1817 = vst [vmem:[#allocation2 + $0x30] sm:$0x7] %v1810_v44  ;;  %v1836_v56 = vpack.c.bf16 %v1820_v9, %v1820_v9  ;;  %v1835_v57 = vpack.c.bf16 %v1818_v55, %v1818_v55  ;;  %v1822_v37 = vld [vmem:[#allocation2 + $0x2] ss:$36 sm:$0x3]  ;;  %v3577_v54 = vld [vmem:[%s566_s23 + $0x28] sm:$0xff]  }
 0x3e9   : > { %v1824_v60 = vld [vmem:[#allocation2 + $0x6] ss:$36 sm:$0x3]  ;;  %v1828_v5 = vld [vmem:[#allocation2 + $0x8] ss:$36 sm:$0x3]  ;;  %v1837_v63 = vpack.c.bf16 %v1822_v37, %v1822_v37 }
 0x3ea   : > { %2459 = vmatprep.mubr.bf16.mxu1 %v1836_v56  ;;  %v1838_v52 = vpack.c.bf16 %v1824_v60, %v1824_v60  ;;  %v1840_v61 = vpack.c.bf16 %v1828_v5, %v1828_v5  ;;  %v1826_v36 = vld [vmem:[#allocation2 + $0x7] ss:$36 sm:$0x3]  ;;  %v3578_v44 = vld [vmem:[%s566_s23 + $0x30] sm:$0xff]   ;;  %v3579_v9 = vld [vmem:[%s566_s23 + $0x38] sm:$0xff]  }
 0x3eb   : > { %2460 = vmatmul.mubr.bf16.vlgmr.msra.gmra.mrb[28].mxu1 %v1835_v57  ;;  %v1839_v8 = vpack.c.bf16 %v1826_v36, %v1826_v36  ;;  %v3576_v26 = vld [vmem:[%s566_s23 + $0x20] sm:$0xff]  }
 0x3ec   : > { %3271 = vmatpush3.bf16.msra.mxu1 %v3533_v59  ;;  %2499 = vmatprep.mubr.bf16.mxu0 %v1838_v52  ;;  %v3004_v56 = vld [vmem:[%s561_s26] ss:$0 sm:$0xff] }
 0x3ed   : > { %2539 = vmatprep.mubr.bf16.mxu1 %v1840_v61  ;;  %2500 = vmatmul.mubr.bf16.vlgmr.msra.gmra.mrb[48].mxu0 %v1837_v63 }
 0x3ee   : > { %3293 = vmatpush3.bf16.msra.mxu0 %v3535_v13  ;;  %3272 = vmatprep.subr.bf16.mxu1 %v3536_v62 }
 0x3ef   : > { %3294 = vmatprep.subr.bf16.mxu0 %v3538_v1  ;;  %v1832_v3 = vld [vmem:[#allocation2 + $0xd] ss:$36 sm:$0x3]  ;;  %v1830_v41 = vld [vmem:[#allocation2 + $0xc] ss:$36 sm:$0x3] }
 0x3f0   : > { %3273 = vmatpush3.bf16.msra.mxu1 %v3537_v38  ;;  %v1842_v10 = vpack.c.bf16 %v1832_v3, %v1832_v3  ;;  %v1841_v43 = vpack.c.bf16 %v1830_v41, %v1830_v41  ;;  %v1834_v21 = vld [vmem:[#allocation2 + $0xe] ss:$36 sm:$0x3] }
 0x3f1   : > { %3274 = vmatprep.subr.bf16.mxu1 %v3540_v2  ;;  %v1843_v49 = vpack.c.bf16 %v1834_v21, %v1834_v21 }
 0x3f2   : > { %3295 = vmatpush3.bf16.msra.mxu0 %v3539_v40  ;;  %2579 = vmatprep.mubr.bf16.mxu0 %v1842_v10 }
 0x3f3   : > { %3296 = vmatprep.subr.bf16.mxu0 %v3542_v6 }
 0x3f4   : > { %3275 = vmatpush3.bf16.msra.mxu1 %v3541_v11 }
 0x3f5   : > { %3276 = vmatprep.subr.bf16.mxu1 %v3544_v12 }
 0x3f6   : > { %3297 = vmatpush3.bf16.msra.mxu0 %v3543_v14 }
 0x3f7   : > { %3298 = vmatprep.subr.bf16.mxu0 %v3546_v16 }
 0x3f8   : > { %3277 = vmatpush3.bf16.msra.mxu1 %v3545_v17 }
 0x3f9   : > { %3278 = vmatprep.subr.bf16.mxu1 %v3548_v18 }
 0x3fa   : > { %3299 = vmatpush3.bf16.msra.mxu0 %v3547_v19 }
 0x3fb   : > { %3300 = vmatprep.subr.bf16.mxu0 %v3550_v7 }
 0x3fc   : > { %3279 = vmatpush3.bf16.msra.mxu1 %v3549_v20 }
 0x3fd   : > { %3280 = vmatprep.subr.bf16.mxu1 %v3552_v22 }
 0x3fe   : > { %3301 = vmatpush3.bf16.msra.mxu0 %v3551_v23 }
 0x3ff   : > { %3302 = vmatprep.subr.bf16.mxu0 %v3554_v24 }
 0x400   : > { %3281 = vmatpush3.bf16.msra.mxu1 %v3553_v4 }
 0x401   : > { %3282 = vmatprep.subr.bf16.mxu1 %v3556_v27  ;;  %v3077_v27 = vld [vmem:[%s569_s29] ss:$0 sm:$0xff] }
 0x402   : > { %3303 = vmatpush3.bf16.msra.mxu0 %v3555_v28 }
 0x403   : > { %3304 = vmatprep.subr.bf16.mxu0 %v3558_v29 }
 0x404   : > { %3283 = vmatpush3.bf16.msra.mxu1 %v3557_v30 }
 0x405   : > { %3284 = vmatprep.subr.bf16.mxu1 %v3560_v31 }
 0x406   : > { %3305 = vmatpush3.bf16.msra.mxu0 %v3559_v32 }
 0x407   : > { %3306 = vmatprep.subr.bf16.mxu0 %v3562_v33 }
 0x408   : > { %3285 = vmatpush3.bf16.msra.mxu1 %v3561_v34 }
 0x409   : > { %3372 = vmatprep.subr.bf16.mxu1 %v3604_v0 }
 0x40a   : > { %3307 = vmatpush3.bf16.msra.mxu0 %v3563_v35 }
 0x40b   : > { %2540 = vmatmul.mubr.bf16.vlgmr.msra.gmra.mrb[32].mxu1 %v1839_v8  ;;  %3392 = vmatprep.subr.bf16.mxu0 %v3604_v0 }
 0x40c   : > { %3373 = vmatpush3.bf16.msra.mxu1 %v3564_v39  ;;  %3388 = vmatprep.mubr.msk.bf16.mxu1 %vm3605_vm1, %v3604_v0 }
 0x40d   : > { %2580 = vmatmul.mubr.bf16.vlgmr.msra.gmra.mrb[52].mxu0 %v1841_v43  ;;  %3374 = vmatprep.subr.bf16.mxu1 %v3604_v0 }
 0x40e   : > { %3408 = vmatprep.mubr.msk.bf16.mxu0 %vm3605_vm1, %v3604_v0  ;;  %3393 = vmatpush3.bf16.msra.mxu0 %v3572_v58 }
 0x40f   : > { %3394 = vmatprep.subr.bf16.mxu0 %v3604_v0 }
 0x410   : > { %3375 = vmatpush3.bf16.msra.mxu1 %v3565_v45 }
 0x411   : > { %3376 = vmatprep.subr.bf16.mxu1 %v3604_v0 }
 0x412   : > { %3395 = vmatpush3.bf16.msra.mxu0 %v3573_v50 }
 0x413   : > { %3396 = vmatprep.subr.bf16.mxu0 %v3604_v0 }
 0x414   : > { %3377 = vmatpush3.bf16.msra.mxu1 %v3566_v25 }
 0x415   : > { %3378 = vmatprep.subr.bf16.mxu1 %v3604_v0 }
 0x416   : > { %3397 = vmatpush3.bf16.msra.mxu0 %v3574_v51 }
 0x417   : > { %3398 = vmatprep.subr.bf16.mxu0 %v3604_v0 }
 0x418   : > { %3379 = vmatpush3.bf16.msra.mxu1 %v3567_v46 }
 0x419   : > { %3380 = vmatprep.subr.bf16.mxu1 %v3604_v0 }
 0x41a   : > { %3399 = vmatpush3.bf16.msra.mxu0 %v3575_v53 }
 0x41b   : > { %3400 = vmatprep.subr.bf16.mxu0 %v3604_v0 }
 0x41c   : > { %3381 = vmatpush3.bf16.msra.mxu1 %v3568_v15 }
 0x41d   : > { %3382 = vmatprep.subr.bf16.mxu1 %v3604_v0 }
 0x41e   : > { %3401 = vmatpush3.bf16.msra.mxu0 %v3576_v26 }
 0x41f   : > { %3402 = vmatprep.subr.bf16.mxu0 %v3604_v0 }
 0x420   : > { %3383 = vmatpush3.bf16.msra.mxu1 %v3569_v47 }
 0x421   : > { %3384 = vmatprep.subr.bf16.mxu1 %v3604_v0 }
 0x422   : > { %3403 = vmatpush3.bf16.msra.mxu0 %v3577_v54 }
 0x423   : > { %3404 = vmatprep.subr.bf16.mxu0 %v3604_v0 }
 0x424   : > { %3385 = vmatpush3.bf16.msra.mxu1 %v3570_v42 }
 0x425   : > { %3386 = vmatprep.subr.bf16.mxu1 %v3604_v0 }
 0x426   : > { %3405 = vmatpush3.bf16.msra.mxu0 %v3578_v44 }
 0x427   : > { %3406 = vmatprep.subr.bf16.mxu0 %v3604_v0 }
 0x428   : > { %3387 = vmatpush3.bf16.msra.mxu1 %v3571_v48 }
 0x42a   : > { %3407 = vmatpush3.bf16.msra.mxu0 %v3579_v9 }
 0x42b   : > { %3389 = vmatmul.mubr.bf16.vlgmr.msra.gmra.mrb[36].mxu1 %v1843_v49 }
 0x4be   : > { %v3242_v55 = vpop.f32.mrb[28].mxu1 }
 0x4bf   : > { %v3243_v57 = vpop.f32.mrb[29].mxu1 }
 0x4c0   : > { %v3244_v59 = vadd.f32 %v3243_v57, %v3242_v55  ;;  %v3245_v37 = vpop.f32.mrb[30].mxu1  ;;  %v3264_v60 = vpop.f32.mrb[48].mxu0 }
 0x4c1   : > { %v3246_v5 = vpop.f32.mrb[31].mxu1  ;;  %v3265_v52 = vpop.f32.mrb[49].mxu0 }
 0x4c2   : > { %v2462_v61 = vadd.f32 %v3244_v59, %v3004_v56  ;;  %v3266_v13 = vadd.f32 %v3265_v52, %v3264_v60  ;;  %v3267_v62 = vpop.f32.mrb[50].mxu0 }
 0x4c3   : > { %v3268_v63 = vpop.f32.mrb[51].mxu0 }
 0x4c4   : > { %v2502_v1 = vadd.f32 %v3266_v13, %v2462_v61 }
 0x4de   : > { %v3286_v38 = vpop.f32.mrb[32].mxu1 }
 0x4df   : > { %v3287_v0 = vpop.f32.mrb[33].mxu1 }
 0x4e0   : > { %v3288_v2 = vadd.f32 %v3287_v0, %v3286_v38  ;;  %v3289_v40 = vpop.f32.mrb[34].mxu1  ;;  %v3308_v3 = vpop.f32.mrb[52].mxu0 }
 0x4e1   : > { %v3290_v6 = vpop.f32.mrb[35].mxu1  ;;  %v3309_v10 = vpop.f32.mrb[53].mxu0 }
 0x4e2   : > { %v2542_v11 = vadd.f32 %v3288_v2, %v2502_v1  ;;  %v3310_v12 = vadd.f32 %v3309_v10, %v3308_v3  ;;  %v3311_v14 = vpop.f32.mrb[54].mxu0 }
 0x4e3   : > { %v3312_v16 = vpop.f32.mrb[55].mxu0 }
 0x4e4   : > { %v2582_v17 = vadd.f32 %v3310_v12, %v2542_v11 }
 0x4fe   : > { %v2621_v18 = vpop.f32.mrb[36].mxu1 }
 0x4ff   : > { %v2622_v19 = vadd.f32 %v2621_v18, %v2582_v17  ;;  %v3390_v7 = vpop.f32.mrb[37].mxu1 }
 0x500   : > { %v2624_v20 = vpop.f32.mrb[38].mxu1 }
 0x501   : > { %vm2627_vm1 = vcmp.gt.f32.partialorder %v2622_v19, 0.0  ;;  %v2628_v22 = vmul.f32 0.01, %v2622_v19  ;;  %v3391_v23 = vpop.f32.mrb[39].mxu1 }
 0x503   : > { %v2629_v24 = vsel %vm2627_vm1, %v2622_v19, %v2628_v22 }
 0x504   : > { %v2630_v4 = vpack.c.bf16 %v2629_v24, %v2629_v24 }
 0x506   : > { %3409 = vmatmul.mubr.bf16.vlgmr.msra.gmra.mrb[56].mxu0 %v2630_v4 }
 0x5d9   : > { %v2736_v28 = vpop.f32.mrb[56].mxu0 }
 0x5da   : > { %v2737_v29 = vadd.f32 %v3077_v27, %v2736_v28  ;;  %v3410_v30 = vpop.f32.mrb[57].mxu0 }
 0x5db   : > { %v2739_v31 = vpop.f32.mrb[58].mxu0 }
 0x5dc   : > { %2742 = vst [vmem:[%s576_s14] sm:$0x3] %v2737_v29  ;;  %v3411_v32 = vpop.f32.mrb[59].mxu0 }
 0x5dd PF: > { %s21_s19 = sadd.s32 1, %s3602_s19   ;;  %s4151_s17 = smov %s3598_s18 }
 0x5de   : > { %p18_p5 = scmp.ge.s32.totalorder %s21_s19, 4   ;;  %s4152_s18 = smov %s4154_s20 }
 0x5e0   :  { %20 = sbr.rel (!%p18_p5) target bundleno = 2 (0x2), region = 132 }

</bundles_post_ra>
